<compile_context>
chip_gen: v7x
topology: tpu7x:2x2x1
jax: 0.10.0
libtpu: 0.0.40
codegen_flags: <defaults>
</compile_context>

<pallas_src>
import jax
import jax.numpy as jnp
from jax import lax
from jax.experimental import pallas as pl
from jax.experimental.pallas import tpu as pltpu

# Neuron hyper-parameters (snnTorch Leaky defaults-ish), baked in as constants.
BETA = 0.9        # membrane decay
THRESH = 1.0      # firing threshold
F32 = jnp.float32
BF16 = jnp.bfloat16


def _round_up(n, m):
    return ((n + m - 1) // m) * m


def l2mu_kernel(
    # inputs
    x_ref,        # (Tt, Bt, Fp)          input tile, bf16
    w_in_ref,     # (Fp, Up+Hp)           [wex | wx]        bf16
    w_hid_ref,    # (Hp, Up+Hp+Op)        [weh | wh | wo]   bf16
    w_mem_ref,    # (Mp, Up+Mp+Hp)        [wem | wa | wm]   bf16
    wb_ref,       # (Up, Mp)              u -> memory       bf16
    be_ref,       # (1, Up)               encoding bias     f32
    bo_ref,       # (1, Op)               output bias       f32
    # output
    out_ref,      # (Tt, Bt, Op)          output spikes     bf16
    # scratch (persistent recurrent state across time tiles)
    proj_h_ref,   # (Bt, Up+Hp)  f32   spk_h_{t-1} @ [weh|wh]
    proj_m_ref,   # (Bt, Up+Mp)  f32   spk_m_{t-1} @ [wem|wa]
    mem_u_ref,    # (Bt, Up)     f32
    mem_m_ref,    # (Bt, Mp)     f32
    mem_h_ref,    # (Bt, Hp)     f32
    mem_o_ref,    # (Bt, Op)     f32
):
    Tt, Bt, _ = x_ref.shape
    Up = be_ref.shape[1]
    Op = bo_ref.shape[1]
    Mp = wb_ref.shape[1]
    Hp = w_hid_ref.shape[0]

    # Re-initialize the recurrent state at the first time tile of each batch
    # tile (time is the innermost grid axis, so t==0 marks a fresh sequence).
    @pl.when(pl.program_id(1) == 0)
    def _():
        proj_h_ref[...] = jnp.zeros_like(proj_h_ref)
        proj_m_ref[...] = jnp.zeros_like(proj_m_ref)
        mem_u_ref[...] = jnp.zeros_like(mem_u_ref)
        mem_m_ref[...] = jnp.zeros_like(mem_m_ref)
        mem_h_ref[...] = jnp.zeros_like(mem_h_ref)
        mem_o_ref[...] = jnp.zeros_like(mem_o_ref)

    # Hoisted bias broadcasts (once per tile, not once per step).
    be = jnp.broadcast_to(be_ref[...], (Bt, Up)).astype(F32)
    bo = jnp.broadcast_to(bo_ref[...], (Bt, Op)).astype(F32)

    def dot_f32(a, w_ref):
        return jnp.dot(a, w_ref[...], preferred_element_type=jnp.float32)

    def leaky(mem, cur):
        # v_t = beta * v_{t-1} + I_t ; spike if v_t > thresh ; reset-by-subtraction.
        v = BETA * mem + cur
        fire = v > THRESH
        return fire, jnp.where(fire, v - THRESH, v)

    def step(t, carry):
        proj_h_prev, proj_m_prev, mem_u, mem_m, mem_h, mem_o = carry

        x_t = x_ref[t]                                     # (Bt, Fp) bf16

        # ---- input projection (lane-dense 256-wide output)
        proj_x = dot_f32(x_t, w_in_ref)                    # (Bt, Up+Hp): [u | h]

        # ---- encoding population u: Leaky(e_x x + e_h h_{t-1} + e_m m_{t-1} + b_e)
        cur_u = proj_x[:, :Up] + proj_h_prev[:, :Up] + proj_m_prev[:, :Up] + be
        fire_u, mem_u = leaky(mem_u, cur_u)
        spk_u = fire_u.astype(BF16)

        # ---- memory population m: Leaky(A m_{t-1} + B u_t)
        cur_m = proj_m_prev[:, Up:] + dot_f32(spk_u, wb_ref)
        fire_m, mem_m = leaky(mem_m, cur_m)
        spk_m = fire_m.astype(BF16)

        # Fused projection of the *current* memory spikes: [wem | wa | wm].
        proj_m_full = dot_f32(spk_m, w_mem_ref)            # (Bt, Up+Mp+Hp)

        # ---- hidden population h: Leaky(W_x x + W_h h_{t-1} + W_m m_t)
        cur_h = proj_x[:, Up:] + proj_h_prev[:, Up:] + proj_m_full[:, Up + Mp:]
        fire_h, mem_h = leaky(mem_h, cur_h)
        spk_h = fire_h.astype(BF16)

        # Fused projection of the *current* hidden spikes: [weh | wh | wo].
        proj_h_full = dot_f32(spk_h, w_hid_ref)            # (Bt, Up+Hp+Op)

        # ---- output population: Leaky(W_o h_t + b_o)
        cur_o = proj_h_full[:, Up + Hp:] + bo
        fire_o, mem_o = leaky(mem_o, cur_o)
        out_ref[t] = fire_o.astype(out_ref.dtype)

        return (proj_h_full[:, :Up + Hp], proj_m_full[:, :Up + Mp],
                mem_u, mem_m, mem_h, mem_o)

    init = (proj_h_ref[...], proj_m_ref[...],
            mem_u_ref[...], mem_m_ref[...], mem_h_ref[...], mem_o_ref[...])
    # Bounded unroll: only Tt steps live in vregs at once; state re-syncs to
    # VMEM scratch at the tile boundary.
    final = lax.fori_loop(0, Tt, step, init, unroll=True)

    proj_h_ref[...] = final[0]
    proj_m_ref[...] = final[1]
    mem_u_ref[...] = final[2]
    mem_m_ref[...] = final[3]
    mem_h_ref[...] = final[4]
    mem_o_ref[...] = final[5]


def l2mu_net(x_seq, params, *, time_tile=8):
    """x_seq: (T, B, C, H, W) float32  ->  output spikes (T, B, O) float32."""
    T, B = int(x_seq.shape[0]), int(x_seq.shape[1])
    F = int(x_seq.shape[2] * x_seq.shape[3] * x_seq.shape[4])
    x_flat = x_seq.reshape(T, B, F)          # torch .flatten(1) per step

    (wex, weh, wem, be, wa, wb, wx, wh, wm, wo, bo) = params
    U, M, Hd, O = wex.shape[1], wa.shape[0], wx.shape[1], wo.shape[1]

    # ---- hardware-friendly padded sizes (true sizes restored by final slice) ----
    if B >= 32:
        Bp = _round_up(B, 32)
        num_b = 2                      # batch split -> 2 TensorCores on megacore parts
    else:
        Bp = _round_up(B, 16)          # 16 rows per bf16 vreg
        num_b = 1
    Bt = Bp // num_b

    Tt = max(1, min(int(time_tile), T))
    Tp = _round_up(T, Tt)
    num_t = Tp // Tt

    Fp = _round_up(F, 128)
    Up = _round_up(U, 128)
    Mp = _round_up(M, 128)
    Hp = _round_up(Hd, 128)
    Op = _round_up(O, 128)

    def pad2(a, rows, cols):
        r, c = a.shape
        return jnp.pad(a, ((0, rows - r), (0, cols - c)))

    # bf16 input slab (padded time steps are zeros; their outputs are sliced away).
    x_pad = jnp.pad(x_flat, ((0, Tp - T), (0, Bp - B), (0, Fp - F))).astype(BF16)

    # Fused, padded, bf16 weights.
    w_in = jnp.concatenate([pad2(wex, Fp, Up), pad2(wx, Fp, Hp)], axis=1).astype(BF16)
    w_hid = jnp.concatenate([pad2(weh, Hp, Up), pad2(wh, Hp, Hp),
                             pad2(wo, Hp, Op)], axis=1).astype(BF16)
    w_mem = jnp.concatenate([pad2(wem, Mp, Up), pad2(wa, Mp, Mp),
                             pad2(wm, Mp, Hp)], axis=1).astype(BF16)
    wb_p = pad2(wb, Up, Mp).astype(BF16)
    be_p = pad2(be, 1, Up).astype(F32)
    bo_p = pad2(bo, 1, Op).astype(F32)

    vmem = pltpu.MemorySpace.VMEM
    x_spec = pl.BlockSpec((Tt, Bt, Fp), lambda b, t: (t, b, 0))
    out_spec = pl.BlockSpec((Tt, Bt, Op), lambda b, t: (t, b, 0))
    w_spec = pl.BlockSpec(memory_space=vmem)   # whole weight resident in VMEM

    scratch_shapes = [
        pltpu.VMEM((Bt, Up + Hp), F32),   # carried spk_h projection
        pltpu.VMEM((Bt, Up + Mp), F32),   # carried spk_m projection
        pltpu.VMEM((Bt, Up), F32),        # mem_u
        pltpu.VMEM((Bt, Mp), F32),        # mem_m
        pltpu.VMEM((Bt, Hp), F32),        # mem_h
        pltpu.VMEM((Bt, Op), F32),        # mem_o
    ]

    # Explicit scoped-VMEM budget from the actual tile footprint (+ headroom).
    w_bytes = 2 * (Fp * (Up + Hp) + Hp * (Up + Hp + Op) + Mp * (Up + Mp + Hp) + Up * Mp)
    x_bytes = 2 * Tt * Bt * Fp * 2          # double-buffered bf16 input tile
    o_bytes = 2 * Tt * Bt * Op * 2          # double-buffered bf16 output tile
    s_bytes = 4 * Bt * ((Up + Hp) + (Up + Mp) + Up + Mp + Hp + Op)
    b_bytes = 4 * 8 * (Up + Op)
    footprint = w_bytes + x_bytes + o_bytes + s_bytes + b_bytes
    vmem_limit = int(min(64 * 1024 * 1024,
                         max(8 * 1024 * 1024, 1.5 * footprint + (2 << 20))))

    out_pad = pl.pallas_call(
        l2mu_kernel,
        out_shape=jax.ShapeDtypeStruct((Tp, Bp, Op), BF16),
        grid=(num_b, num_t),
        in_specs=[x_spec, w_spec, w_spec, w_spec, w_spec, w_spec, w_spec],
        out_specs=out_spec,
        scratch_shapes=scratch_shapes,
        compiler_params=pltpu.CompilerParams(
            dimension_semantics=("parallel", "arbitrary"),
            vmem_limit_bytes=vmem_limit),
    )(x_pad, w_in, w_hid, w_mem, wb_p, be_p, bo_p)

    return out_pad[:T, :B, :O].astype(F32)


def init_params(key, input_size, hidden_size, memory_size, u_size, output_size):
    """Deterministic PyTorch-Linear-style init: U(-1/sqrt(fan_in), 1/sqrt(fan_in)).
    All weights stored pre-transposed as (in_features, out_features), f32."""
    def lin(k, fan_in, fan_out):
        bound = 1.0 / jnp.sqrt(jnp.asarray(fan_in, F32))
        return jax.random.uniform(k, (fan_in, fan_out), F32, -bound, bound)

    ks = jax.random.split(key, 12)
    wex = lin(ks[0], input_size, u_size)
    weh = lin(ks[1], hidden_size, u_size)
    wem = lin(ks[2], memory_size, u_size)
    be = jax.random.uniform(ks[3], (1, u_size), F32,
                            -1.0 / jnp.sqrt(float(input_size)),
                            1.0 / jnp.sqrt(float(input_size)))
    wa = lin(ks[4], memory_size, memory_size)
    wb = lin(ks[5], u_size, memory_size)
    wx = lin(ks[6], input_size, hidden_size)
    wh = lin(ks[7], hidden_size, hidden_size)
    wm = lin(ks[8], memory_size, hidden_size)
    wo = lin(ks[9], hidden_size, output_size)
    bo = jax.random.uniform(ks[10], (1, output_size), F32,
                            -1.0 / jnp.sqrt(float(hidden_size)),
                            1.0 / jnp.sqrt(float(hidden_size)))
    return (wex, weh, wem, be, wa, wb, wx, wh, wm, wo, bo)


if __name__ == "__main__":
    # Small, module-consistent shapes: seq=8, batch=2, channels=4, spatial=4x4.
    T, B, C, Hs, Ws = 8, 2, 4, 4, 4
    input_size = C * Hs * Ws          # 64
    hidden_size = 32
    memory_size = 32
    u_size = 32
    output_size = 16

    key = jax.random.PRNGKey(0)
    k_x, k_p = jax.random.split(key)
    # Scale inputs up a bit so the spiking populations actually fire.
    x_seq = 2.0 * jax.random.normal(k_x, (T, B, C, Hs, Ws), F32)
    params = init_params(k_p, input_size, hidden_size, memory_size, u_size, output_size)

    # time_tile=4 -> 2 time-grid steps, exercising the state carry across tiles.
    out = l2mu_net(x_seq, params, time_tile=4)
    out = jax.block_until_ready(out)

    assert out.shape == (T, B, output_size)
    assert bool(jnp.all(jnp.isfinite(out)))
    # Spikes must be binary.
    assert bool(jnp.all((out == 0.0) | (out == 1.0)))
    print("KERNEL_OK")
</pallas_src>

<mosaic_0001>
module attributes {stable_mosaic.version = 11 : i64} {
  func.func @l2mu_kernel(%arg0: i32, %arg1: i32, %arg2: memref<4x16x128xbf16, #tpu.memory_space<vmem>>, %arg3: memref<128x256xbf16, #tpu.memory_space<vmem>>, %arg4: memref<128x384xbf16, #tpu.memory_space<vmem>>, %arg5: memref<128x384xbf16, #tpu.memory_space<vmem>>, %arg6: memref<128x128xbf16, #tpu.memory_space<vmem>>, %arg7: memref<1x128xf32, #tpu.memory_space<vmem>>, %arg8: memref<1x128xf32, #tpu.memory_space<vmem>>, %arg9: memref<4x16x128xbf16, #tpu.memory_space<vmem>>, %arg10: memref<16x256xf32, #tpu.memory_space<vmem>>, %arg11: memref<16x256xf32, #tpu.memory_space<vmem>>, %arg12: memref<16x128xf32, #tpu.memory_space<vmem>>, %arg13: memref<16x128xf32, #tpu.memory_space<vmem>>, %arg14: memref<16x128xf32, #tpu.memory_space<vmem>>, %arg15: memref<16x128xf32, #tpu.memory_space<vmem>>) attributes {dimension_semantics = [#tpu.dimension_semantics<parallel>, #tpu.dimension_semantics<arbitrary>], iteration_bounds = array<i64: 1, 2>, scalar_prefetch = 0 : i64, scratch_operands = 6 : i64, tpu.core_type = #tpu.core_type<tc>, window_params = [{transform_indices = @transform_0, window_bounds = array<i64: 4, 16, 128>}, {pipeline_mode = #tpu.pipeline_mode<synchronous>, transform_indices = @transform_1, window_bounds = array<i64: 128, 256>}, {pipeline_mode = #tpu.pipeline_mode<synchronous>, transform_indices = @transform_2, window_bounds = array<i64: 128, 384>}, {pipeline_mode = #tpu.pipeline_mode<synchronous>, transform_indices = @transform_3, window_bounds = array<i64: 128, 384>}, {pipeline_mode = #tpu.pipeline_mode<synchronous>, transform_indices = @transform_4, window_bounds = array<i64: 128, 128>}, {pipeline_mode = #tpu.pipeline_mode<synchronous>, transform_indices = @transform_5, window_bounds = array<i64: 1, 128>}, {pipeline_mode = #tpu.pipeline_mode<synchronous>, transform_indices = @transform_6, window_bounds = array<i64: 1, 128>}, {transform_indices = @transform_7, window_bounds = array<i64: 4, 16, 128>}]} {
    %c0_i32 = arith.constant 0 : i32
    %0 = arith.cmpi eq, %arg1, %c0_i32 : i32
    %1 = arith.extui %0 : i1 to i32
    %c0_i32_0 = arith.constant 0 : i32
    %2 = arith.cmpi ne, %1, %c0_i32_0 : i32
    scf.if %2 {
      %cst_140 = arith.constant 0.000000e+00 : f32
      %325 = vector.broadcast %cst_140 : f32 to vector<16x256xf32>
      %c0_141 = arith.constant 0 : index
      %c0_142 = arith.constant 0 : index
      %326 = vector.load %arg10[%c0_141, %c0_142] : memref<16x256xf32, #tpu.memory_space<vmem>>, vector<16x256xf32>
      tpu.vector_store %arg10[%c0_141, %c0_142], %325 {strides = array<i32>} : memref<16x256xf32, #tpu.memory_space<vmem>>, vector<16x256xf32>,
      %cst_143 = arith.constant 0.000000e+00 : f32
      %327 = vector.broadcast %cst_143 : f32 to vector<16x256xf32>
      %c0_144 = arith.constant 0 : index
      %c0_145 = arith.constant 0 : index
      %328 = vector.load %arg11[%c0_144, %c0_145] : memref<16x256xf32, #tpu.memory_space<vmem>>, vector<16x256xf32>
      tpu.vector_store %arg11[%c0_144, %c0_145], %327 {strides = array<i32>} : memref<16x256xf32, #tpu.memory_space<vmem>>, vector<16x256xf32>,
      %cst_146 = arith.constant 0.000000e+00 : f32
      %329 = vector.broadcast %cst_146 : f32 to vector<16x128xf32>
      %c0_147 = arith.constant 0 : index
      %c0_148 = arith.constant 0 : index
      %330 = vector.load %arg12[%c0_147, %c0_148] : memref<16x128xf32, #tpu.memory_space<vmem>>, vector<16x128xf32>
      tpu.vector_store %arg12[%c0_147, %c0_148], %329 {strides = array<i32>} : memref<16x128xf32, #tpu.memory_space<vmem>>, vector<16x128xf32>,
      %cst_149 = arith.constant 0.000000e+00 : f32
      %331 = vector.broadcast %cst_149 : f32 to vector<16x128xf32>
      %c0_150 = arith.constant 0 : index
      %c0_151 = arith.constant 0 : index
      %332 = vector.load %arg13[%c0_150, %c0_151] : memref<16x128xf32, #tpu.memory_space<vmem>>, vector<16x128xf32>
      tpu.vector_store %arg13[%c0_150, %c0_151], %331 {strides = array<i32>} : memref<16x128xf32, #tpu.memory_space<vmem>>, vector<16x128xf32>,
      %cst_152 = arith.constant 0.000000e+00 : f32
      %333 = vector.broadcast %cst_152 : f32 to vector<16x128xf32>
      %c0_153 = arith.constant 0 : index
      %c0_154 = arith.constant 0 : index
      %334 = vector.load %arg14[%c0_153, %c0_154] : memref<16x128xf32, #tpu.memory_space<vmem>>, vector<16x128xf32>
      tpu.vector_store %arg14[%c0_153, %c0_154], %333 {strides = array<i32>} : memref<16x128xf32, #tpu.memory_space<vmem>>, vector<16x128xf32>,
      %cst_155 = arith.constant 0.000000e+00 : f32
      %335 = vector.broadcast %cst_155 : f32 to vector<16x128xf32>
      %c0_156 = arith.constant 0 : index
      %c0_157 = arith.constant 0 : index
      %336 = vector.load %arg15[%c0_156, %c0_157] : memref<16x128xf32, #tpu.memory_space<vmem>>, vector<16x128xf32>
      tpu.vector_store %arg15[%c0_156, %c0_157], %335 {strides = array<i32>} : memref<16x128xf32, #tpu.memory_space<vmem>>, vector<16x128xf32>,
    } else {
    }
    %c0 = arith.constant 0 : index
    %c0_1 = arith.constant 0 : index
    %3 = vector.load %arg7[%c0, %c0_1] : memref<1x128xf32, #tpu.memory_space<vmem>>, vector<1x128xf32>
    %4 = vector.shape_cast %3 : vector<1x128xf32> to vector<1x128xf32>
    %5 = vector.broadcast %4 : vector<1x128xf32> to vector<16x128xf32>
    %c0_2 = arith.constant 0 : index
    %c0_3 = arith.constant 0 : index
    %6 = vector.load %arg8[%c0_2, %c0_3] : memref<1x128xf32, #tpu.memory_space<vmem>>, vector<1x128xf32>
    %7 = vector.shape_cast %6 : vector<1x128xf32> to vector<1x128xf32>
    %8 = vector.broadcast %7 : vector<1x128xf32> to vector<16x128xf32>
    %c0_4 = arith.constant 0 : index
    %c0_5 = arith.constant 0 : index
    %9 = vector.load %arg10[%c0_4, %c0_5] : memref<16x256xf32, #tpu.memory_space<vmem>>, vector<16x256xf32>
    %c0_6 = arith.constant 0 : index
    %c0_7 = arith.constant 0 : index
    %10 = vector.load %arg11[%c0_6, %c0_7] : memref<16x256xf32, #tpu.memory_space<vmem>>, vector<16x256xf32>
    %c0_8 = arith.constant 0 : index
    %c0_9 = arith.constant 0 : index
    %11 = vector.load %arg12[%c0_8, %c0_9] : memref<16x128xf32, #tpu.memory_space<vmem>>, vector<16x128xf32>
    %c0_10 = arith.constant 0 : index
    %c0_11 = arith.constant 0 : index
    %12 = vector.load %arg13[%c0_10, %c0_11] : memref<16x128xf32, #tpu.memory_space<vmem>>, vector<16x128xf32>
    %c0_12 = arith.constant 0 : index
    %c0_13 = arith.constant 0 : index
    %13 = vector.load %arg14[%c0_12, %c0_13] : memref<16x128xf32, #tpu.memory_space<vmem>>, vector<16x128xf32>
    %c0_14 = arith.constant 0 : index
    %c0_15 = arith.constant 0 : index
    %14 = vector.load %arg15[%c0_14, %c0_15] : memref<16x128xf32, #tpu.memory_space<vmem>>, vector<16x128xf32>
    %c0_i32_16 = arith.constant 0 : i32
    %15 = arith.index_cast %c0_i32_16 : i32 to index
    %c0_17 = arith.constant 0 : index
    %c0_18 = arith.constant 0 : index
    %16 = vector.load %arg2[%15, %c0_17, %c0_18] : memref<4x16x128xbf16, #tpu.memory_space<vmem>>, vector<1x16x128xbf16>
    %17 = vector.shape_cast %16 : vector<1x16x128xbf16> to vector<16x128xbf16>
    %c0_19 = arith.constant 0 : index
    %c0_20 = arith.constant 0 : index
    %18 = vector.load %arg3[%c0_19, %c0_20] : memref<128x256xbf16, #tpu.memory_space<vmem>>, vector<128x256xbf16>
    %cst = arith.constant dense<0.000000e+00> : vector<16x256xf32>
    %19 = tpu.matmul %17, %18, %cst {dimension_numbers = #tpu.dot_dimension_numbers<[1], [0], [0], [1], [0, 0, 1, 1], [], []>} : vector<16x128xbf16>, vector<128x256xbf16>, vector<16x256xf32> -> vector<16x256xf32>
    %20 = vector.extract_strided_slice %19 {offsets = [0, 0], sizes = [16, 128], strides = [1, 1]} : vector<16x256xf32> to vector<16x128xf32>
    %21 = vector.extract_strided_slice %9 {offsets = [0, 0], sizes = [16, 128], strides = [1, 1]} : vector<16x256xf32> to vector<16x128xf32>
    %22 = arith.addf %20, %21 : vector<16x128xf32>
    %23 = vector.extract_strided_slice %10 {offsets = [0, 0], sizes = [16, 128], strides = [1, 1]} : vector<16x256xf32> to vector<16x128xf32>
    %24 = arith.addf %22, %23 : vector<16x128xf32>
    %25 = arith.addf %24, %5 : vector<16x128xf32>
    %cst_21 = arith.constant 0.899999976 : f32
    %26 = vector.broadcast %cst_21 : f32 to vector<16x128xf32>
    %27 = arith.mulf %26, %11 : vector<16x128xf32>
    %28 = arith.addf %27, %25 : vector<16x128xf32>
    %cst_22 = arith.constant 1.000000e+00 : f32
    %29 = vector.broadcast %cst_22 : f32 to vector<16x128xf32>
    %30 = arith.cmpf ogt, %28, %29 : vector<16x128xf32>
    %cst_23 = arith.constant 1.000000e+00 : f32
    %31 = vector.broadcast %cst_23 : f32 to vector<16x128xf32>
    %32 = arith.subf %28, %31 : vector<16x128xf32>
    %33 = arith.select %30, %32, %28 : vector<16x128xi1>, vector<16x128xf32>
    %34 = arith.extui %30 : vector<16x128xi1> to vector<16x128xi32>
    %35 = arith.sitofp %34 : vector<16x128xi32> to vector<16x128xf32>
    %36 = arith.truncf %35 : vector<16x128xf32> to vector<16x128xbf16>
    %37 = vector.extract_strided_slice %10 {offsets = [0, 128], sizes = [16, 128], strides = [1, 1]} : vector<16x256xf32> to vector<16x128xf32>
    %c0_24 = arith.constant 0 : index
    %c0_25 = arith.constant 0 : index
    %38 = vector.load %arg6[%c0_24, %c0_25] : memref<128x128xbf16, #tpu.memory_space<vmem>>, vector<128x128xbf16>
    %cst_26 = arith.constant dense<0.000000e+00> : vector<16x128xf32>
    %39 = tpu.matmul %36, %38, %cst_26 {dimension_numbers = #tpu.dot_dimension_numbers<[1], [0], [0], [1], [0, 0, 1, 1], [], []>} : vector<16x128xbf16>, vector<128x128xbf16>, vector<16x128xf32> -> vector<16x128xf32>
    %40 = arith.addf %37, %39 : vector<16x128xf32>
    %cst_27 = arith.constant 0.899999976 : f32
    %41 = vector.broadcast %cst_27 : f32 to vector<16x128xf32>
    %42 = arith.mulf %41, %12 : vector<16x128xf32>
    %43 = arith.addf %42, %40 : vector<16x128xf32>
    %cst_28 = arith.constant 1.000000e+00 : f32
    %44 = vector.broadcast %cst_28 : f32 to vector<16x128xf32>
    %45 = arith.cmpf ogt, %43, %44 : vector<16x128xf32>
    %cst_29 = arith.constant 1.000000e+00 : f32
    %46 = vector.broadcast %cst_29 : f32 to vector<16x128xf32>
    %47 = arith.subf %43, %46 : vector<16x128xf32>
    %48 = arith.select %45, %47, %43 : vector<16x128xi1>, vector<16x128xf32>
    %49 = arith.extui %45 : vector<16x128xi1> to vector<16x128xi32>
    %50 = arith.sitofp %49 : vector<16x128xi32> to vector<16x128xf32>
    %51 = arith.truncf %50 : vector<16x128xf32> to vector<16x128xbf16>
    %c0_30 = arith.constant 0 : index
    %c0_31 = arith.constant 0 : index
    %52 = vector.load %arg5[%c0_30, %c0_31] : memref<128x384xbf16, #tpu.memory_space<vmem>>, vector<128x384xbf16>
    %cst_32 = arith.constant dense<0.000000e+00> : vector<16x384xf32>
    %53 = tpu.matmul %51, %52, %cst_32 {dimension_numbers = #tpu.dot_dimension_numbers<[1], [0], [0], [1], [0, 0, 1, 1], [], []>} : vector<16x128xbf16>, vector<128x384xbf16>, vector<16x384xf32> -> vector<16x384xf32>
    %54 = vector.extract_strided_slice %19 {offsets = [0, 128], sizes = [16, 128], strides = [1, 1]} : vector<16x256xf32> to vector<16x128xf32>
    %55 = vector.extract_strided_slice %9 {offsets = [0, 128], sizes = [16, 128], strides = [1, 1]} : vector<16x256xf32> to vector<16x128xf32>
    %56 = arith.addf %54, %55 : vector<16x128xf32>
    %57 = vector.extract_strided_slice %53 {offsets = [0, 256], sizes = [16, 128], strides = [1, 1]} : vector<16x384xf32> to vector<16x128xf32>
    %58 = arith.addf %56, %57 : vector<16x128xf32>
    %cst_33 = arith.constant 0.899999976 : f32
    %59 = vector.broadcast %cst_33 : f32 to vector<16x128xf32>
    %60 = arith.mulf %59, %13 : vector<16x128xf32>
    %61 = arith.addf %60, %58 : vector<16x128xf32>
    %cst_34 = arith.constant 1.000000e+00 : f32
    %62 = vector.broadcast %cst_34 : f32 to vector<16x128xf32>
    %63 = arith.cmpf ogt, %61, %62 : vector<16x128xf32>
    %cst_35 = arith.constant 1.000000e+00 : f32
    %64 = vector.broadcast %cst_35 : f32 to vector<16x128xf32>
    %65 = arith.subf %61, %64 : vector<16x128xf32>
    %66 = arith.select %63, %65, %61 : vector<16x128xi1>, vector<16x128xf32>
    %67 = arith.extui %63 : vector<16x128xi1> to vector<16x128xi32>
    %68 = arith.sitofp %67 : vector<16x128xi32> to vector<16x128xf32>
    %69 = arith.truncf %68 : vector<16x128xf32> to vector<16x128xbf16>
    %c0_36 = arith.constant 0 : index
    %c0_37 = arith.constant 0 : index
    %70 = vector.load %arg4[%c0_36, %c0_37] : memref<128x384xbf16, #tpu.memory_space<vmem>>, vector<128x384xbf16>
    %cst_38 = arith.constant dense<0.000000e+00> : vector<16x384xf32>
    %71 = tpu.matmul %69, %70, %cst_38 {dimension_numbers = #tpu.dot_dimension_numbers<[1], [0], [0], [1], [0, 0, 1, 1], [], []>} : vector<16x128xbf16>, vector<128x384xbf16>, vector<16x384xf32> -> vector<16x384xf32>
    %72 = vector.extract_strided_slice %71 {offsets = [0, 256], sizes = [16, 128], strides = [1, 1]} : vector<16x384xf32> to vector<16x128xf32>
    %73 = arith.addf %72, %8 : vector<16x128xf32>
    %cst_39 = arith.constant 0.899999976 : f32
    %74 = vector.broadcast %cst_39 : f32 to vector<16x128xf32>
    %75 = arith.mulf %74, %14 : vector<16x128xf32>
    %76 = arith.addf %75, %73 : vector<16x128xf32>
    %cst_40 = arith.constant 1.000000e+00 : f32
    %77 = vector.broadcast %cst_40 : f32 to vector<16x128xf32>
    %78 = arith.cmpf ogt, %76, %77 : vector<16x128xf32>
    %cst_41 = arith.constant 1.000000e+00 : f32
    %79 = vector.broadcast %cst_41 : f32 to vector<16x128xf32>
    %80 = arith.subf %76, %79 : vector<16x128xf32>
    %81 = arith.select %78, %80, %76 : vector<16x128xi1>, vector<16x128xf32>
    %82 = arith.extui %78 : vector<16x128xi1> to vector<16x128xi32>
    %83 = arith.sitofp %82 : vector<16x128xi32> to vector<16x128xf32>
    %84 = arith.truncf %83 : vector<16x128xf32> to vector<16x128xbf16>
    %85 = arith.index_cast %c0_i32_16 : i32 to index
    %c0_42 = arith.constant 0 : index
    %c0_43 = arith.constant 0 : index
    %86 = vector.load %arg9[%85, %c0_42, %c0_43] : memref<4x16x128xbf16, #tpu.memory_space<vmem>>, vector<1x16x128xbf16>
    %87 = vector.shape_cast %86 : vector<1x16x128xbf16> to vector<16x128xbf16>
    %88 = vector.shape_cast %84 : vector<16x128xbf16> to vector<1x16x128xbf16>
    tpu.vector_store %arg9[%85, %c0_42, %c0_43], %88 {strides = array<i32>} : memref<4x16x128xbf16, #tpu.memory_space<vmem>>, vector<1x16x128xbf16>,
    %89 = vector.extract_strided_slice %71 {offsets = [0, 0], sizes = [16, 256], strides = [1, 1]} : vector<16x384xf32> to vector<16x256xf32>
    %90 = vector.extract_strided_slice %53 {offsets = [0, 0], sizes = [16, 256], strides = [1, 1]} : vector<16x384xf32> to vector<16x256xf32>
    %c1_i32 = arith.constant 1 : i32
    %91 = arith.index_cast %c1_i32 : i32 to index
    %c0_44 = arith.constant 0 : index
    %c0_45 = arith.constant 0 : index
    %92 = vector.load %arg2[%91, %c0_44, %c0_45] : memref<4x16x128xbf16, #tpu.memory_space<vmem>>, vector<1x16x128xbf16>
    %93 = vector.shape_cast %92 : vector<1x16x128xbf16> to vector<16x128xbf16>
    %c0_46 = arith.constant 0 : index
    %c0_47 = arith.constant 0 : index
    %94 = vector.load %arg3[%c0_46, %c0_47] : memref<128x256xbf16, #tpu.memory_space<vmem>>, vector<128x256xbf16>
    %cst_48 = arith.constant dense<0.000000e+00> : vector<16x256xf32>
    %95 = tpu.matmul %93, %94, %cst_48 {dimension_numbers = #tpu.dot_dimension_numbers<[1], [0], [0], [1], [0, 0, 1, 1], [], []>} : vector<16x128xbf16>, vector<128x256xbf16>, vector<16x256xf32> -> vector<16x256xf32>
    %96 = vector.extract_strided_slice %95 {offsets = [0, 0], sizes = [16, 128], strides = [1, 1]} : vector<16x256xf32> to vector<16x128xf32>
    %97 = vector.extract_strided_slice %89 {offsets = [0, 0], sizes = [16, 128], strides = [1, 1]} : vector<16x256xf32> to vector<16x128xf32>
    %98 = arith.addf %96, %97 : vector<16x128xf32>
    %99 = vector.extract_strided_slice %90 {offsets = [0, 0], sizes = [16, 128], strides = [1, 1]} : vector<16x256xf32> to vector<16x128xf32>
    %100 = arith.addf %98, %99 : vector<16x128xf32>
    %101 = arith.addf %100, %5 : vector<16x128xf32>
    %cst_49 = arith.constant 0.899999976 : f32
    %102 = vector.broadcast %cst_49 : f32 to vector<16x128xf32>
    %103 = arith.mulf %102, %33 : vector<16x128xf32>
    %104 = arith.addf %103, %101 : vector<16x128xf32>
    %cst_50 = arith.constant 1.000000e+00 : f32
    %105 = vector.broadcast %cst_50 : f32 to vector<16x128xf32>
    %106 = arith.cmpf ogt, %104, %105 : vector<16x128xf32>
    %cst_51 = arith.constant 1.000000e+00 : f32
    %107 = vector.broadcast %cst_51 : f32 to vector<16x128xf32>
    %108 = arith.subf %104, %107 : vector<16x128xf32>
    %109 = arith.select %106, %108, %104 : vector<16x128xi1>, vector<16x128xf32>
    %110 = arith.extui %106 : vector<16x128xi1> to vector<16x128xi32>
    %111 = arith.sitofp %110 : vector<16x128xi32> to vector<16x128xf32>
    %112 = arith.truncf %111 : vector<16x128xf32> to vector<16x128xbf16>
    %113 = vector.extract_strided_slice %90 {offsets = [0, 128], sizes = [16, 128], strides = [1, 1]} : vector<16x256xf32> to vector<16x128xf32>
    %c0_52 = arith.constant 0 : index
    %c0_53 = arith.constant 0 : index
    %114 = vector.load %arg6[%c0_52, %c0_53] : memref<128x128xbf16, #tpu.memory_space<vmem>>, vector<128x128xbf16>
    %cst_54 = arith.constant dense<0.000000e+00> : vector<16x128xf32>
    %115 = tpu.matmul %112, %114, %cst_54 {dimension_numbers = #tpu.dot_dimension_numbers<[1], [0], [0], [1], [0, 0, 1, 1], [], []>} : vector<16x128xbf16>, vector<128x128xbf16>, vector<16x128xf32> -> vector<16x128xf32>
    %116 = arith.addf %113, %115 : vector<16x128xf32>
    %cst_55 = arith.constant 0.899999976 : f32
    %117 = vector.broadcast %cst_55 : f32 to vector<16x128xf32>
    %118 = arith.mulf %117, %48 : vector<16x128xf32>
    %119 = arith.addf %118, %116 : vector<16x128xf32>
    %cst_56 = arith.constant 1.000000e+00 : f32
    %120 = vector.broadcast %cst_56 : f32 to vector<16x128xf32>
    %121 = arith.cmpf ogt, %119, %120 : vector<16x128xf32>
    %cst_57 = arith.constant 1.000000e+00 : f32
    %122 = vector.broadcast %cst_57 : f32 to vector<16x128xf32>
    %123 = arith.subf %119, %122 : vector<16x128xf32>
    %124 = arith.select %121, %123, %119 : vector<16x128xi1>, vector<16x128xf32>
    %125 = arith.extui %121 : vector<16x128xi1> to vector<16x128xi32>
    %126 = arith.sitofp %125 : vector<16x128xi32> to vector<16x128xf32>
    %127 = arith.truncf %126 : vector<16x128xf32> to vector<16x128xbf16>
    %c0_58 = arith.constant 0 : index
    %c0_59 = arith.constant 0 : index
    %128 = vector.load %arg5[%c0_58, %c0_59] : memref<128x384xbf16, #tpu.memory_space<vmem>>, vector<128x384xbf16>
    %cst_60 = arith.constant dense<0.000000e+00> : vector<16x384xf32>
    %129 = tpu.matmul %127, %128, %cst_60 {dimension_numbers = #tpu.dot_dimension_numbers<[1], [0], [0], [1], [0, 0, 1, 1], [], []>} : vector<16x128xbf16>, vector<128x384xbf16>, vector<16x384xf32> -> vector<16x384xf32>
    %130 = vector.extract_strided_slice %95 {offsets = [0, 128], sizes = [16, 128], strides = [1, 1]} : vector<16x256xf32> to vector<16x128xf32>
    %131 = vector.extract_strided_slice %89 {offsets = [0, 128], sizes = [16, 128], strides = [1, 1]} : vector<16x256xf32> to vector<16x128xf32>
    %132 = arith.addf %130, %131 : vector<16x128xf32>
    %133 = vector.extract_strided_slice %129 {offsets = [0, 256], sizes = [16, 128], strides = [1, 1]} : vector<16x384xf32> to vector<16x128xf32>
    %134 = arith.addf %132, %133 : vector<16x128xf32>
    %cst_61 = arith.constant 0.899999976 : f32
    %135 = vector.broadcast %cst_61 : f32 to vector<16x128xf32>
    %136 = arith.mulf %135, %66 : vector<16x128xf32>
    %137 = arith.addf %136, %134 : vector<16x128xf32>
    %cst_62 = arith.constant 1.000000e+00 : f32
    %138 = vector.broadcast %cst_62 : f32 to vector<16x128xf32>
    %139 = arith.cmpf ogt, %137, %138 : vector<16x128xf32>
    %cst_63 = arith.constant 1.000000e+00 : f32
    %140 = vector.broadcast %cst_63 : f32 to vector<16x128xf32>
    %141 = arith.subf %137, %140 : vector<16x128xf32>
    %142 = arith.select %139, %141, %137 : vector<16x128xi1>, vector<16x128xf32>
    %143 = arith.extui %139 : vector<16x128xi1> to vector<16x128xi32>
    %144 = arith.sitofp %143 : vector<16x128xi32> to vector<16x128xf32>
    %145 = arith.truncf %144 : vector<16x128xf32> to vector<16x128xbf16>
    %c0_64 = arith.constant 0 : index
    %c0_65 = arith.constant 0 : index
    %146 = vector.load %arg4[%c0_64, %c0_65] : memref<128x384xbf16, #tpu.memory_space<vmem>>, vector<128x384xbf16>
    %cst_66 = arith.constant dense<0.000000e+00> : vector<16x384xf32>
    %147 = tpu.matmul %145, %146, %cst_66 {dimension_numbers = #tpu.dot_dimension_numbers<[1], [0], [0], [1], [0, 0, 1, 1], [], []>} : vector<16x128xbf16>, vector<128x384xbf16>, vector<16x384xf32> -> vector<16x384xf32>
    %148 = vector.extract_strided_slice %147 {offsets = [0, 256], sizes = [16, 128], strides = [1, 1]} : vector<16x384xf32> to vector<16x128xf32>
    %149 = arith.addf %148, %8 : vector<16x128xf32>
    %cst_67 = arith.constant 0.899999976 : f32
    %150 = vector.broadcast %cst_67 : f32 to vector<16x128xf32>
    %151 = arith.mulf %150, %81 : vector<16x128xf32>
    %152 = arith.addf %151, %149 : vector<16x128xf32>
    %cst_68 = arith.constant 1.000000e+00 : f32
    %153 = vector.broadcast %cst_68 : f32 to vector<16x128xf32>
    %154 = arith.cmpf ogt, %152, %153 : vector<16x128xf32>
    %cst_69 = arith.constant 1.000000e+00 : f32
    %155 = vector.broadcast %cst_69 : f32 to vector<16x128xf32>
    %156 = arith.subf %152, %155 : vector<16x128xf32>
    %157 = arith.select %154, %156, %152 : vector<16x128xi1>, vector<16x128xf32>
    %158 = arith.extui %154 : vector<16x128xi1> to vector<16x128xi32>
    %159 = arith.sitofp %158 : vector<16x128xi32> to vector<16x128xf32>
    %160 = arith.truncf %159 : vector<16x128xf32> to vector<16x128xbf16>
    %161 = arith.index_cast %c1_i32 : i32 to index
    %c0_70 = arith.constant 0 : index
    %c0_71 = arith.constant 0 : index
    %162 = vector.load %arg9[%161, %c0_70, %c0_71] : memref<4x16x128xbf16, #tpu.memory_space<vmem>>, vector<1x16x128xbf16>
    %163 = vector.shape_cast %162 : vector<1x16x128xbf16> to vector<16x128xbf16>
    %164 = vector.shape_cast %160 : vector<16x128xbf16> to vector<1x16x128xbf16>
    tpu.vector_store %arg9[%161, %c0_70, %c0_71], %164 {strides = array<i32>} : memref<4x16x128xbf16, #tpu.memory_space<vmem>>, vector<1x16x128xbf16>,
    %165 = vector.extract_strided_slice %147 {offsets = [0, 0], sizes = [16, 256], strides = [1, 1]} : vector<16x384xf32> to vector<16x256xf32>
    %166 = vector.extract_strided_slice %129 {offsets = [0, 0], sizes = [16, 256], strides = [1, 1]} : vector<16x384xf32> to vector<16x256xf32>
    %c2_i32 = arith.constant 2 : i32
    %167 = arith.index_cast %c2_i32 : i32 to index
    %c0_72 = arith.constant 0 : index
    %c0_73 = arith.constant 0 : index
    %168 = vector.load %arg2[%167, %c0_72, %c0_73] : memref<4x16x128xbf16, #tpu.memory_space<vmem>>, vector<1x16x128xbf16>
    %169 = vector.shape_cast %168 : vector<1x16x128xbf16> to vector<16x128xbf16>
    %c0_74 = arith.constant 0 : index
    %c0_75 = arith.constant 0 : index
    %170 = vector.load %arg3[%c0_74, %c0_75] : memref<128x256xbf16, #tpu.memory_space<vmem>>, vector<128x256xbf16>
    %cst_76 = arith.constant dense<0.000000e+00> : vector<16x256xf32>
    %171 = tpu.matmul %169, %170, %cst_76 {dimension_numbers = #tpu.dot_dimension_numbers<[1], [0], [0], [1], [0, 0, 1, 1], [], []>} : vector<16x128xbf16>, vector<128x256xbf16>, vector<16x256xf32> -> vector<16x256xf32>
    %172 = vector.extract_strided_slice %171 {offsets = [0, 0], sizes = [16, 128], strides = [1, 1]} : vector<16x256xf32> to vector<16x128xf32>
    %173 = vector.extract_strided_slice %165 {offsets = [0, 0], sizes = [16, 128], strides = [1, 1]} : vector<16x256xf32> to vector<16x128xf32>
    %174 = arith.addf %172, %173 : vector<16x128xf32>
    %175 = vector.extract_strided_slice %166 {offsets = [0, 0], sizes = [16, 128], strides = [1, 1]} : vector<16x256xf32> to vector<16x128xf32>
    %176 = arith.addf %174, %175 : vector<16x128xf32>
    %177 = arith.addf %176, %5 : vector<16x128xf32>
    %cst_77 = arith.constant 0.899999976 : f32
    %178 = vector.broadcast %cst_77 : f32 to vector<16x128xf32>
    %179 = arith.mulf %178, %109 : vector<16x128xf32>
    %180 = arith.addf %179, %177 : vector<16x128xf32>
    %cst_78 = arith.constant 1.000000e+00 : f32
    %181 = vector.broadcast %cst_78 : f32 to vector<16x128xf32>
    %182 = arith.cmpf ogt, %180, %181 : vector<16x128xf32>
    %cst_79 = arith.constant 1.000000e+00 : f32
    %183 = vector.broadcast %cst_79 : f32 to vector<16x128xf32>
    %184 = arith.subf %180, %183 : vector<16x128xf32>
    %185 = arith.select %182, %184, %180 : vector<16x128xi1>, vector<16x128xf32>
    %186 = arith.extui %182 : vector<16x128xi1> to vector<16x128xi32>
    %187 = arith.sitofp %186 : vector<16x128xi32> to vector<16x128xf32>
    %188 = arith.truncf %187 : vector<16x128xf32> to vector<16x128xbf16>
    %189 = vector.extract_strided_slice %166 {offsets = [0, 128], sizes = [16, 128], strides = [1, 1]} : vector<16x256xf32> to vector<16x128xf32>
    %c0_80 = arith.constant 0 : index
    %c0_81 = arith.constant 0 : index
    %190 = vector.load %arg6[%c0_80, %c0_81] : memref<128x128xbf16, #tpu.memory_space<vmem>>, vector<128x128xbf16>
    %cst_82 = arith.constant dense<0.000000e+00> : vector<16x128xf32>
    %191 = tpu.matmul %188, %190, %cst_82 {dimension_numbers = #tpu.dot_dimension_numbers<[1], [0], [0], [1], [0, 0, 1, 1], [], []>} : vector<16x128xbf16>, vector<128x128xbf16>, vector<16x128xf32> -> vector<16x128xf32>
    %192 = arith.addf %189, %191 : vector<16x128xf32>
    %cst_83 = arith.constant 0.899999976 : f32
    %193 = vector.broadcast %cst_83 : f32 to vector<16x128xf32>
    %194 = arith.mulf %193, %124 : vector<16x128xf32>
    %195 = arith.addf %194, %192 : vector<16x128xf32>
    %cst_84 = arith.constant 1.000000e+00 : f32
    %196 = vector.broadcast %cst_84 : f32 to vector<16x128xf32>
    %197 = arith.cmpf ogt, %195, %196 : vector<16x128xf32>
    %cst_85 = arith.constant 1.000000e+00 : f32
    %198 = vector.broadcast %cst_85 : f32 to vector<16x128xf32>
    %199 = arith.subf %195, %198 : vector<16x128xf32>
    %200 = arith.select %197, %199, %195 : vector<16x128xi1>, vector<16x128xf32>
    %201 = arith.extui %197 : vector<16x128xi1> to vector<16x128xi32>
    %202 = arith.sitofp %201 : vector<16x128xi32> to vector<16x128xf32>
    %203 = arith.truncf %202 : vector<16x128xf32> to vector<16x128xbf16>
    %c0_86 = arith.constant 0 : index
    %c0_87 = arith.constant 0 : index
    %204 = vector.load %arg5[%c0_86, %c0_87] : memref<128x384xbf16, #tpu.memory_space<vmem>>, vector<128x384xbf16>
    %cst_88 = arith.constant dense<0.000000e+00> : vector<16x384xf32>
    %205 = tpu.matmul %203, %204, %cst_88 {dimension_numbers = #tpu.dot_dimension_numbers<[1], [0], [0], [1], [0, 0, 1, 1], [], []>} : vector<16x128xbf16>, vector<128x384xbf16>, vector<16x384xf32> -> vector<16x384xf32>
    %206 = vector.extract_strided_slice %171 {offsets = [0, 128], sizes = [16, 128], strides = [1, 1]} : vector<16x256xf32> to vector<16x128xf32>
    %207 = vector.extract_strided_slice %165 {offsets = [0, 128], sizes = [16, 128], strides = [1, 1]} : vector<16x256xf32> to vector<16x128xf32>
    %208 = arith.addf %206, %207 : vector<16x128xf32>
    %209 = vector.extract_strided_slice %205 {offsets = [0, 256], sizes = [16, 128], strides = [1, 1]} : vector<16x384xf32> to vector<16x128xf32>
    %210 = arith.addf %208, %209 : vector<16x128xf32>
    %cst_89 = arith.constant 0.899999976 : f32
    %211 = vector.broadcast %cst_89 : f32 to vector<16x128xf32>
    %212 = arith.mulf %211, %142 : vector<16x128xf32>
    %213 = arith.addf %212, %210 : vector<16x128xf32>
    %cst_90 = arith.constant 1.000000e+00 : f32
    %214 = vector.broadcast %cst_90 : f32 to vector<16x128xf32>
    %215 = arith.cmpf ogt, %213, %214 : vector<16x128xf32>
    %cst_91 = arith.constant 1.000000e+00 : f32
    %216 = vector.broadcast %cst_91 : f32 to vector<16x128xf32>
    %217 = arith.subf %213, %216 : vector<16x128xf32>
    %218 = arith.select %215, %217, %213 : vector<16x128xi1>, vector<16x128xf32>
    %219 = arith.extui %215 : vector<16x128xi1> to vector<16x128xi32>
    %220 = arith.sitofp %219 : vector<16x128xi32> to vector<16x128xf32>
    %221 = arith.truncf %220 : vector<16x128xf32> to vector<16x128xbf16>
    %c0_92 = arith.constant 0 : index
    %c0_93 = arith.constant 0 : index
    %222 = vector.load %arg4[%c0_92, %c0_93] : memref<128x384xbf16, #tpu.memory_space<vmem>>, vector<128x384xbf16>
    %cst_94 = arith.constant dense<0.000000e+00> : vector<16x384xf32>
    %223 = tpu.matmul %221, %222, %cst_94 {dimension_numbers = #tpu.dot_dimension_numbers<[1], [0], [0], [1], [0, 0, 1, 1], [], []>} : vector<16x128xbf16>, vector<128x384xbf16>, vector<16x384xf32> -> vector<16x384xf32>
    %224 = vector.extract_strided_slice %223 {offsets = [0, 256], sizes = [16, 128], strides = [1, 1]} : vector<16x384xf32> to vector<16x128xf32>
    %225 = arith.addf %224, %8 : vector<16x128xf32>
    %cst_95 = arith.constant 0.899999976 : f32
    %226 = vector.broadcast %cst_95 : f32 to vector<16x128xf32>
    %227 = arith.mulf %226, %157 : vector<16x128xf32>
    %228 = arith.addf %227, %225 : vector<16x128xf32>
    %cst_96 = arith.constant 1.000000e+00 : f32
    %229 = vector.broadcast %cst_96 : f32 to vector<16x128xf32>
    %230 = arith.cmpf ogt, %228, %229 : vector<16x128xf32>
    %cst_97 = arith.constant 1.000000e+00 : f32
    %231 = vector.broadcast %cst_97 : f32 to vector<16x128xf32>
    %232 = arith.subf %228, %231 : vector<16x128xf32>
    %233 = arith.select %230, %232, %228 : vector<16x128xi1>, vector<16x128xf32>
    %234 = arith.extui %230 : vector<16x128xi1> to vector<16x128xi32>
    %235 = arith.sitofp %234 : vector<16x128xi32> to vector<16x128xf32>
    %236 = arith.truncf %235 : vector<16x128xf32> to vector<16x128xbf16>
    %237 = arith.index_cast %c2_i32 : i32 to index
    %c0_98 = arith.constant 0 : index
    %c0_99 = arith.constant 0 : index
    %238 = vector.load %arg9[%237, %c0_98, %c0_99] : memref<4x16x128xbf16, #tpu.memory_space<vmem>>, vector<1x16x128xbf16>
    %239 = vector.shape_cast %238 : vector<1x16x128xbf16> to vector<16x128xbf16>
    %240 = vector.shape_cast %236 : vector<16x128xbf16> to vector<1x16x128xbf16>
    tpu.vector_store %arg9[%237, %c0_98, %c0_99], %240 {strides = array<i32>} : memref<4x16x128xbf16, #tpu.memory_space<vmem>>, vector<1x16x128xbf16>,
    %241 = vector.extract_strided_slice %223 {offsets = [0, 0], sizes = [16, 256], strides = [1, 1]} : vector<16x384xf32> to vector<16x256xf32>
    %242 = vector.extract_strided_slice %205 {offsets = [0, 0], sizes = [16, 256], strides = [1, 1]} : vector<16x384xf32> to vector<16x256xf32>
    %c3_i32 = arith.constant 3 : i32
    %243 = arith.index_cast %c3_i32 : i32 to index
    %c0_100 = arith.constant 0 : index
    %c0_101 = arith.constant 0 : index
    %244 = vector.load %arg2[%243, %c0_100, %c0_101] : memref<4x16x128xbf16, #tpu.memory_space<vmem>>, vector<1x16x128xbf16>
    %245 = vector.shape_cast %244 : vector<1x16x128xbf16> to vector<16x128xbf16>
    %c0_102 = arith.constant 0 : index
    %c0_103 = arith.constant 0 : index
    %246 = vector.load %arg3[%c0_102, %c0_103] : memref<128x256xbf16, #tpu.memory_space<vmem>>, vector<128x256xbf16>
    %cst_104 = arith.constant dense<0.000000e+00> : vector<16x256xf32>
    %247 = tpu.matmul %245, %246, %cst_104 {dimension_numbers = #tpu.dot_dimension_numbers<[1], [0], [0], [1], [0, 0, 1, 1], [], []>} : vector<16x128xbf16>, vector<128x256xbf16>, vector<16x256xf32> -> vector<16x256xf32>
    %248 = vector.extract_strided_slice %247 {offsets = [0, 0], sizes = [16, 128], strides = [1, 1]} : vector<16x256xf32> to vector<16x128xf32>
    %249 = vector.extract_strided_slice %241 {offsets = [0, 0], sizes = [16, 128], strides = [1, 1]} : vector<16x256xf32> to vector<16x128xf32>
    %250 = arith.addf %248, %249 : vector<16x128xf32>
    %251 = vector.extract_strided_slice %242 {offsets = [0, 0], sizes = [16, 128], strides = [1, 1]} : vector<16x256xf32> to vector<16x128xf32>
    %252 = arith.addf %250, %251 : vector<16x128xf32>
    %253 = arith.addf %252, %5 : vector<16x128xf32>
    %cst_105 = arith.constant 0.899999976 : f32
    %254 = vector.broadcast %cst_105 : f32 to vector<16x128xf32>
    %255 = arith.mulf %254, %185 : vector<16x128xf32>
    %256 = arith.addf %255, %253 : vector<16x128xf32>
    %cst_106 = arith.constant 1.000000e+00 : f32
    %257 = vector.broadcast %cst_106 : f32 to vector<16x128xf32>
    %258 = arith.cmpf ogt, %256, %257 : vector<16x128xf32>
    %cst_107 = arith.constant 1.000000e+00 : f32
    %259 = vector.broadcast %cst_107 : f32 to vector<16x128xf32>
    %260 = arith.subf %256, %259 : vector<16x128xf32>
    %261 = arith.select %258, %260, %256 : vector<16x128xi1>, vector<16x128xf32>
    %262 = arith.extui %258 : vector<16x128xi1> to vector<16x128xi32>
    %263 = arith.sitofp %262 : vector<16x128xi32> to vector<16x128xf32>
    %264 = arith.truncf %263 : vector<16x128xf32> to vector<16x128xbf16>
    %265 = vector.extract_strided_slice %242 {offsets = [0, 128], sizes = [16, 128], strides = [1, 1]} : vector<16x256xf32> to vector<16x128xf32>
    %c0_108 = arith.constant 0 : index
    %c0_109 = arith.constant 0 : index
    %266 = vector.load %arg6[%c0_108, %c0_109] : memref<128x128xbf16, #tpu.memory_space<vmem>>, vector<128x128xbf16>
    %cst_110 = arith.constant dense<0.000000e+00> : vector<16x128xf32>
    %267 = tpu.matmul %264, %266, %cst_110 {dimension_numbers = #tpu.dot_dimension_numbers<[1], [0], [0], [1], [0, 0, 1, 1], [], []>} : vector<16x128xbf16>, vector<128x128xbf16>, vector<16x128xf32> -> vector<16x128xf32>
    %268 = arith.addf %265, %267 : vector<16x128xf32>
    %cst_111 = arith.constant 0.899999976 : f32
    %269 = vector.broadcast %cst_111 : f32 to vector<16x128xf32>
    %270 = arith.mulf %269, %200 : vector<16x128xf32>
    %271 = arith.addf %270, %268 : vector<16x128xf32>
    %cst_112 = arith.constant 1.000000e+00 : f32
    %272 = vector.broadcast %cst_112 : f32 to vector<16x128xf32>
    %273 = arith.cmpf ogt, %271, %272 : vector<16x128xf32>
    %cst_113 = arith.constant 1.000000e+00 : f32
    %274 = vector.broadcast %cst_113 : f32 to vector<16x128xf32>
    %275 = arith.subf %271, %274 : vector<16x128xf32>
    %276 = arith.select %273, %275, %271 : vector<16x128xi1>, vector<16x128xf32>
    %277 = arith.extui %273 : vector<16x128xi1> to vector<16x128xi32>
    %278 = arith.sitofp %277 : vector<16x128xi32> to vector<16x128xf32>
    %279 = arith.truncf %278 : vector<16x128xf32> to vector<16x128xbf16>
    %c0_114 = arith.constant 0 : index
    %c0_115 = arith.constant 0 : index
    %280 = vector.load %arg5[%c0_114, %c0_115] : memref<128x384xbf16, #tpu.memory_space<vmem>>, vector<128x384xbf16>
    %cst_116 = arith.constant dense<0.000000e+00> : vector<16x384xf32>
    %281 = tpu.matmul %279, %280, %cst_116 {dimension_numbers = #tpu.dot_dimension_numbers<[1], [0], [0], [1], [0, 0, 1, 1], [], []>} : vector<16x128xbf16>, vector<128x384xbf16>, vector<16x384xf32> -> vector<16x384xf32>
    %282 = vector.extract_strided_slice %247 {offsets = [0, 128], sizes = [16, 128], strides = [1, 1]} : vector<16x256xf32> to vector<16x128xf32>
    %283 = vector.extract_strided_slice %241 {offsets = [0, 128], sizes = [16, 128], strides = [1, 1]} : vector<16x256xf32> to vector<16x128xf32>
    %284 = arith.addf %282, %283 : vector<16x128xf32>
    %285 = vector.extract_strided_slice %281 {offsets = [0, 256], sizes = [16, 128], strides = [1, 1]} : vector<16x384xf32> to vector<16x128xf32>
    %286 = arith.addf %284, %285 : vector<16x128xf32>
    %cst_117 = arith.constant 0.899999976 : f32
    %287 = vector.broadcast %cst_117 : f32 to vector<16x128xf32>
    %288 = arith.mulf %287, %218 : vector<16x128xf32>
    %289 = arith.addf %288, %286 : vector<16x128xf32>
    %cst_118 = arith.constant 1.000000e+00 : f32
    %290 = vector.broadcast %cst_118 : f32 to vector<16x128xf32>
    %291 = arith.cmpf ogt, %289, %290 : vector<16x128xf32>
    %cst_119 = arith.constant 1.000000e+00 : f32
    %292 = vector.broadcast %cst_119 : f32 to vector<16x128xf32>
    %293 = arith.subf %289, %292 : vector<16x128xf32>
    %294 = arith.select %291, %293, %289 : vector<16x128xi1>, vector<16x128xf32>
    %295 = arith.extui %291 : vector<16x128xi1> to vector<16x128xi32>
    %296 = arith.sitofp %295 : vector<16x128xi32> to vector<16x128xf32>
    %297 = arith.truncf %296 : vector<16x128xf32> to vector<16x128xbf16>
    %c0_120 = arith.constant 0 : index
    %c0_121 = arith.constant 0 : index
    %298 = vector.load %arg4[%c0_120, %c0_121] : memref<128x384xbf16, #tpu.memory_space<vmem>>, vector<128x384xbf16>
    %cst_122 = arith.constant dense<0.000000e+00> : vector<16x384xf32>
    %299 = tpu.matmul %297, %298, %cst_122 {dimension_numbers = #tpu.dot_dimension_numbers<[1], [0], [0], [1], [0, 0, 1, 1], [], []>} : vector<16x128xbf16>, vector<128x384xbf16>, vector<16x384xf32> -> vector<16x384xf32>
    %300 = vector.extract_strided_slice %299 {offsets = [0, 256], sizes = [16, 128], strides = [1, 1]} : vector<16x384xf32> to vector<16x128xf32>
    %301 = arith.addf %300, %8 : vector<16x128xf32>
    %cst_123 = arith.constant 0.899999976 : f32
    %302 = vector.broadcast %cst_123 : f32 to vector<16x128xf32>
    %303 = arith.mulf %302, %233 : vector<16x128xf32>
    %304 = arith.addf %303, %301 : vector<16x128xf32>
    %cst_124 = arith.constant 1.000000e+00 : f32
    %305 = vector.broadcast %cst_124 : f32 to vector<16x128xf32>
    %306 = arith.cmpf ogt, %304, %305 : vector<16x128xf32>
    %cst_125 = arith.constant 1.000000e+00 : f32
    %307 = vector.broadcast %cst_125 : f32 to vector<16x128xf32>
    %308 = arith.subf %304, %307 : vector<16x128xf32>
    %309 = arith.select %306, %308, %304 : vector<16x128xi1>, vector<16x128xf32>
    %310 = arith.extui %306 : vector<16x128xi1> to vector<16x128xi32>
    %311 = arith.sitofp %310 : vector<16x128xi32> to vector<16x128xf32>
    %312 = arith.truncf %311 : vector<16x128xf32> to vector<16x128xbf16>
    %313 = arith.index_cast %c3_i32 : i32 to index
    %c0_126 = arith.constant 0 : index
    %c0_127 = arith.constant 0 : index
    %314 = vector.load %arg9[%313, %c0_126, %c0_127] : memref<4x16x128xbf16, #tpu.memory_space<vmem>>, vector<1x16x128xbf16>
    %315 = vector.shape_cast %314 : vector<1x16x128xbf16> to vector<16x128xbf16>
    %316 = vector.shape_cast %312 : vector<16x128xbf16> to vector<1x16x128xbf16>
    tpu.vector_store %arg9[%313, %c0_126, %c0_127], %316 {strides = array<i32>} : memref<4x16x128xbf16, #tpu.memory_space<vmem>>, vector<1x16x128xbf16>,
    %317 = vector.extract_strided_slice %299 {offsets = [0, 0], sizes = [16, 256], strides = [1, 1]} : vector<16x384xf32> to vector<16x256xf32>
    %318 = vector.extract_strided_slice %281 {offsets = [0, 0], sizes = [16, 256], strides = [1, 1]} : vector<16x384xf32> to vector<16x256xf32>
    %c4_i32 = arith.constant 4 : i32
    %c0_128 = arith.constant 0 : index
    %c0_129 = arith.constant 0 : index
    %319 = vector.load %arg10[%c0_128, %c0_129] : memref<16x256xf32, #tpu.memory_space<vmem>>, vector<16x256xf32>
    tpu.vector_store %arg10[%c0_128, %c0_129], %317 {strides = array<i32>} : memref<16x256xf32, #tpu.memory_space<vmem>>, vector<16x256xf32>,
    %c0_130 = arith.constant 0 : index
    %c0_131 = arith.constant 0 : index
    %320 = vector.load %arg11[%c0_130, %c0_131] : memref<16x256xf32, #tpu.memory_space<vmem>>, vector<16x256xf32>
    tpu.vector_store %arg11[%c0_130, %c0_131], %318 {strides = array<i32>} : memref<16x256xf32, #tpu.memory_space<vmem>>, vector<16x256xf32>,
    %c0_132 = arith.constant 0 : index
    %c0_133 = arith.constant 0 : index
    %321 = vector.load %arg12[%c0_132, %c0_133] : memref<16x128xf32, #tpu.memory_space<vmem>>, vector<16x128xf32>
    tpu.vector_store %arg12[%c0_132, %c0_133], %261 {strides = array<i32>} : memref<16x128xf32, #tpu.memory_space<vmem>>, vector<16x128xf32>,
    %c0_134 = arith.constant 0 : index
    %c0_135 = arith.constant 0 : index
    %322 = vector.load %arg13[%c0_134, %c0_135] : memref<16x128xf32, #tpu.memory_space<vmem>>, vector<16x128xf32>
    tpu.vector_store %arg13[%c0_134, %c0_135], %276 {strides = array<i32>} : memref<16x128xf32, #tpu.memory_space<vmem>>, vector<16x128xf32>,
    %c0_136 = arith.constant 0 : index
    %c0_137 = arith.constant 0 : index
    %323 = vector.load %arg14[%c0_136, %c0_137] : memref<16x128xf32, #tpu.memory_space<vmem>>, vector<16x128xf32>
    tpu.vector_store %arg14[%c0_136, %c0_137], %294 {strides = array<i32>} : memref<16x128xf32, #tpu.memory_space<vmem>>, vector<16x128xf32>,
    %c0_138 = arith.constant 0 : index
    %c0_139 = arith.constant 0 : index
    %324 = vector.load %arg15[%c0_138, %c0_139] : memref<16x128xf32, #tpu.memory_space<vmem>>, vector<16x128xf32>
    tpu.vector_store %arg15[%c0_138, %c0_139], %309 {strides = array<i32>} : memref<16x128xf32, #tpu.memory_space<vmem>>, vector<16x128xf32>,
    return
  }
  func.func @transform_0(%arg0: i32, %arg1: i32) -> (i32, i32, i32) {
    %c0_i32 = arith.constant 0 : i32
    %c0_i32_0 = arith.constant 0 : i32
    return %arg1, %arg0, %c0_i32 : i32, i32, i32
  }
  func.func @transform_1(%arg0: i32, %arg1: i32) -> (i32, i32) {
    %c0_i32 = arith.constant 0 : i32
    %c0_i32_0 = arith.constant 0 : i32
    %c0_i32_1 = arith.constant 0 : i32
    return %c0_i32, %c0_i32_0 : i32, i32
  }
  func.func @transform_2(%arg0: i32, %arg1: i32) -> (i32, i32) {
    %c0_i32 = arith.constant 0 : i32
    %c0_i32_0 = arith.constant 0 : i32
    %c0_i32_1 = arith.constant 0 : i32
    return %c0_i32, %c0_i32_0 : i32, i32
  }
  func.func @transform_3(%arg0: i32, %arg1: i32) -> (i32, i32) {
    %c0_i32 = arith.constant 0 : i32
    %c0_i32_0 = arith.constant 0 : i32
    %c0_i32_1 = arith.constant 0 : i32
    return %c0_i32, %c0_i32_0 : i32, i32
  }
  func.func @transform_4(%arg0: i32, %arg1: i32) -> (i32, i32) {
    %c0_i32 = arith.constant 0 : i32
    %c0_i32_0 = arith.constant 0 : i32
    %c0_i32_1 = arith.constant 0 : i32
    return %c0_i32, %c0_i32_0 : i32, i32
  }
  func.func @transform_5(%arg0: i32, %arg1: i32) -> (i32, i32) {
    %c0_i32 = arith.constant 0 : i32
    %c0_i32_0 = arith.constant 0 : i32
    %c0_i32_1 = arith.constant 0 : i32
    return %c0_i32, %c0_i32_0 : i32, i32
  }
  func.func @transform_6(%arg0: i32, %arg1: i32) -> (i32, i32) {
    %c0_i32 = arith.constant 0 : i32
    %c0_i32_0 = arith.constant 0 : i32
    %c0_i32_1 = arith.constant 0 : i32
    return %c0_i32, %c0_i32_0 : i32, i32
  }
  func.func @transform_7(%arg0: i32, %arg1: i32) -> (i32, i32, i32) {
    %c0_i32 = arith.constant 0 : i32
    %c0_i32_0 = arith.constant 0 : i32
    return %arg1, %arg0, %c0_i32 : i32, i32, i32
  }
}

</mosaic_0001>

<bundles_post_ra>
// kernel: tpu_custom_call.1
= control target key start
LH: loop header
LB: loop body
LE: loop exit
PB: predicated region body
PF: predicated region fallthrough
CT: control target
= control target key end

     0   :  { %s6337_s0 = inlined_call_operand.hbm [shape: bf16[8,16,128], index: 0, kind: input, shape index: {}]   ;;  %s6338_s1 = inlined_call_operand.hbm [shape: bf16[128,256], index: 1, kind: input, shape index: {}]   ;;  %s6339_s2 = inlined_call_operand.hbm [shape: bf16[128,384], index: 2, kind: input, shape index: {}]   ;;  %s6340_s3 = inlined_call_operand.hbm [shape: bf16[128,384], index: 3, kind: input, shape index: {}]   ;;  %s6341_s4 = inlined_call_operand.hbm [shape: bf16[128,128], index: 4, kind: input, shape index: {}]   ;;  %s6342_s5 = inlined_call_operand.vmem [shape: f32[1,128], index: 5, kind: input, shape index: {}]   ;;  %s6343_s6 = inlined_call_operand.vmem [shape: f32[1,128], index: 6, kind: input, shape index: {}]   ;;  %s6344_s7 = inlined_call_operand.hbm [shape: bf16[8,16,128], index: 7, kind: output, shape index: {}]  }
   0x1   :  { %6370 = sst [smem:[#allocation34_spill]] %s6342_s5 }
   0x2   :  { %6371 = sst [smem:[#allocation35_spill]] %s6343_s6 }
   0x3   :  { %6372 = sst [smem:[#allocation36_spill]] %s6344_s7 }
   0x4   :  { %12 = vsyncpa [#allocation9], 0 }
   0x5   :  { %14 = vsyncpa [#allocation9 + $0x1], 0 }
   0x6   :  { %15 = vsyncpa [#allocation12], 0 }
   0x7   :  { %16 = vsyncpa [#allocation15], 0 }
   0x8   :  { %17 = vsyncpa [#allocation10], 0 }
   0x9   :  { %19 = vsyncpa [#allocation10 + $0x1], 0  ;;  %s5384_s24 = smov 0   ;;  %s5386_s25 = smov 0  }
   0xa   :  { %s5388_s26 = smov 0   ;;  %s5390_s27 = smov 0  }
   0xb   :  { %s5392_s28 = smov 0   ;;  %s5394_s29 = smov 0  }
   0xc LB: > { %6373 = sst [smem:[#allocation22_spill]] %s5303_s24  ;;  %s3885_s30 = sadd.s32 4294967295, %s5323_s29   ;;  %s5323_s29 = sphi %s5394_s29, %s25_s29   ;;  %s5319_s28 = sphi %s5392_s28, %s6422_s28   ;;  %s5315_s27 = sphi %s5390_s27, %s6421_s27   ;;  %s5311_s26 = sphi %s5388_s26, %s6420_s26   ;;  %s5307_s25 = sphi %s5386_s25, %s6419_s25   ;;  %s5303_s24 = sphi %s5384_s24, %s6418_s24  }
   0xd   : > { %s3886_s8 = sadd.s32 4294967294, %s5323_s29   ;;  %p59_p0 = scmp.ne.s32.totalorder %s5307_s25, %s5303_s24 }
   0xe   : > { %p5418_p1 = scmp.eq.s32.totalorder %s3885_s30, 0  ;;  %p5422_p2 = scmp.eq.s32.totalorder %s3885_s30, 1 }
   0xf   : > { %p217_p3 = scmp.eq.s32.totalorder %s3886_s8, 1  ;;  %p3887_p5 = scmp.ge.s32.totalorder %s5323_s29, 1 }
  0x10   : > { %s6374_s9 = scalar_select %p5418_p1, 1, 0 }
  0x11   : > { %s6375_s10 = scalar_select %p5422_p2, 1, 0 }
  0x12   : > { %p5428_p4 = por %p5418_p1, %p59_p0  ;;  %p5433_p6 = por %p217_p3, %p59_p0 }
  0x13   : > { %p224_p7 = scmp.lt.s32.totalorder %s5323_s29, 3  ;;  %s5325_s14 = smov [#allocation11]  }
  0x14   : > { %s6376_s11 = scalar_select %p5428_p4, 1, 0 }
  0x15   : > { %s6377_s12 = scalar_select %p5433_p6, 1, 0 }
  0x16   : > { %p5438_p8 = pnand %p3887_p5, %p224_p7  ;;  %s236_s15 = sshll.u32 %s5325_s14, 4  ;;  %s237_s15 = int_to_ptr.vmem [resolvable:$true] %s236_s15 }
  0x17   : > { %6378 = sst [smem:[#allocation23_spill]] %s6377_s12  ;;  %s5326_s17 = smov [#allocation14]  }
  0x18   : > { %s6379_s13 = scalar_select %p5438_p8, 1, 0 }
  0x19   : > { %p4736_p9 = pneg %p5438_p8  ;;  %s262_s18 = sshll.u32 %s5326_s17, 4  ;;  %s263_s18 = int_to_ptr.vmem [resolvable:$true] %s262_s18 }
  0x1a   : > { %s5091_s21 = scalar_lea.hbm %s6338_s1, 2048 }
  0x1b   : > { %p5447_p11 = pnand %p4736_p9, %p5418_p1  ;;  %p5092_p12 = scmp.ne.s32.totalorder %s6338_s1, %s5091_s21 }
  0x1c   : > { %p5098_p5 = scmp.lt.u32.totalorder %s5091_s21, %s6338_s1 }
  0x1d   : > { %p5459_p13 = pneg %p5447_p11 }
  0x1f   : > { %p5094_p0 = pnand %p5459_p13, %p5092_p12 }
  0x21   : > { %p5095_p3 = pneg %p5094_p0 }
  0x23   : > { %p5100_p7 = pnand %p5098_p5, %p5095_p3 }
  0x25   : > { %5103 = shalt.err (!%p5100_p7)
}
  0x26   : > { %s5104_s17 = scalar_lea.vmem %s237_s15, 2048  ;;  %p5112_p1 = scmp.lt.s32.totalorder %s237_s15, %s237_s15 }
  0x27   : > { %p5105_p9 = scmp.ne.s32.totalorder %s237_s15, %s5104_s17  ;;  %p5113_p4 = scmp.lt.s32.totalorder %s5104_s17, %s5104_s17 }
  0x29   : > { %p5107_p10 = pnand %p5105_p9, %p5459_p13  ;;  %p5114_p8 = por %p5113_p4, %p5112_p1 }
  0x2b   : > { %p5108_p6 = pneg %p5107_p10 }
  0x2d   : > { %p5115_p2 = pnand %p5114_p8, %p5108_p6 }
  0x2f   : > { %5118 = shalt.err (!%p5115_p2)
}
  0x30   : > { %s5327_s19 = smov 128   ;;  %s5328_s20 = smov 8  }
  0x31   : > { %4739 = dma.hbm_to_vmem [thread:$0]  (!%p5447_p11), %s6338_s1, 2048, %s237_s15, [#allocation12], %s5327_s19, %s5327_s19, %s5328_s20  }
  0x32   : > { %s5329_s23 = smov [#allocation13]   ;;  %s5119_s24 = scalar_lea.hbm %s6340_s3, 3072 }
  0x33   : > { %s249_s8 = sshll.u32 %s5329_s23, 4  ;;  %p5120_p1 = scmp.ne.s32.totalorder %s6340_s3, %s5119_s24  ;;  %s250_s8 = int_to_ptr.vmem [resolvable:$true] %s249_s8 }
  0x34   : > { %p5126_p6 = scmp.lt.u32.totalorder %s5119_s24, %s6340_s3 }
  0x35   : > { %p5122_p2 = pnand %p5120_p1, %p5459_p13 }
  0x37   : > { %p5123_p4 = pneg %p5122_p2 }
  0x39   : > { %p5128_p8 = pnand %p5126_p6, %p5123_p4 }
  0x3b   : > { %5131 = shalt.err (!%p5128_p8)
}
  0x3c   : > { %s5132_s15 = scalar_lea.vmem %s263_s18, 3072  ;;  %p5140_p3 = scmp.lt.s32.totalorder %s263_s18, %s263_s18 }
  0x3d   : > { %p5133_p10 = scmp.ne.s32.totalorder %s263_s18, %s5132_s15  ;;  %p5141_p5 = scmp.lt.s32.totalorder %s5132_s15, %s5132_s15 }
  0x3f   : > { %p5135_p12 = pnand %p5133_p10, %p5459_p13  ;;  %p5142_p7 = por %p5141_p5, %p5140_p3 }
  0x41   : > { %p5136_p0 = pneg %p5135_p12 }
  0x43   : > { %p5143_p9 = pnand %p5142_p7, %p5136_p0 }
  0x45   : > { %5146 = shalt.err (!%p5143_p9)
}
  0x46   : > { %s5330_s7 = smov 192   ;;  %s5331_s12 = smov 12  }
  0x47   : > { %4745 = dma.hbm_to_vmem [thread:$0]  (!%p5447_p11), %s6340_s3, 3072, %s263_s18, [#allocation15], %s5330_s7, %s5330_s7, %s5331_s12  }
  0x48   : > { %s5147_s20 = scalar_lea.hbm %s6339_s2, 3072 }
  0x49   : > { %p5148_p1 = scmp.ne.s32.totalorder %s6339_s2, %s5147_s20  ;;  %p5154_p6 = scmp.lt.u32.totalorder %s5147_s20, %s6339_s2 }
  0x4b   : > { %p5150_p2 = pnand %p5148_p1, %p5459_p13 }
  0x4d   : > { %p5151_p4 = pneg %p5150_p2 }
  0x4f   : > { %p5156_p8 = pnand %p5154_p6, %p5151_p4 }
  0x51   : > { %5159 = shalt.err (!%p5156_p8)
}
  0x52   : > { %s5160_s17 = scalar_lea.vmem %s250_s8, 3072  ;;  %p5168_p3 = scmp.lt.s32.totalorder %s250_s8, %s250_s8 }
  0x53   : > { %p5161_p10 = scmp.ne.s32.totalorder %s250_s8, %s5160_s17  ;;  %p5169_p5 = scmp.lt.s32.totalorder %s5160_s17, %s5160_s17 }
  0x55   : > { %p5163_p12 = pnand %p5161_p10, %p5459_p13  ;;  %p5170_p7 = por %p5169_p5, %p5168_p3 }
  0x57   : > { %p5164_p0 = pneg %p5163_p12 }
  0x59   : > { %p5171_p9 = pnand %p5170_p7, %p5164_p0 }
  0x5b   : > { %5174 = shalt.err (!%p5171_p9)
}
  0x5c   : > { %4742 = dma.hbm_to_vmem [thread:$0]  (!%p5447_p11), %s6339_s2, 3072, %s250_s8, [#allocation12], %s5330_s7, %s5330_s7, %s5331_s12  }
  0x5d   : > { %s5332_s5 = smov [#allocation16]   ;;  %s5175_s20 = scalar_lea.hbm %s6341_s4, 1024 }
  0x5e   : > { %s275_s6 = sshll.u32 %s5332_s5, 4  ;;  %p5176_p1 = scmp.ne.s32.totalorder %s6341_s4, %s5175_s20  ;;  %s276_s6 = int_to_ptr.vmem [resolvable:$true] %s275_s6 }
  0x5f   : > { %p5182_p6 = scmp.lt.u32.totalorder %s5175_s20, %s6341_s4 }
  0x60   : > { %p5178_p2 = pnand %p5176_p1, %p5459_p13 }
  0x62   : > { %p5179_p4 = pneg %p5178_p2 }
  0x64   : > { %p5184_p8 = pnand %p5182_p6, %p5179_p4 }
  0x66   : > { %5187 = shalt.err (!%p5184_p8)
}
  0x67   : > { %s5188_s8 = scalar_lea.vmem %s276_s6, 1024  ;;  %p5196_p3 = scmp.lt.s32.totalorder %s276_s6, %s276_s6 }
  0x68   : > { %p5189_p10 = scmp.ne.s32.totalorder %s276_s6, %s5188_s8  ;;  %p5197_p5 = scmp.lt.s32.totalorder %s5188_s8, %s5188_s8 }
  0x6a   : > { %p5191_p12 = pnand %p5189_p10, %p5459_p13  ;;  %p5198_p7 = por %p5197_p5, %p5196_p3 }
  0x6c   : > { %p5192_p0 = pneg %p5191_p12 }
  0x6e   : > { %p5199_p9 = pnand %p5198_p7, %p5192_p0 }
  0x70   : > { %5202 = shalt.err (!%p5199_p9)
}
  0x71   : > { %s5333_s7 = smov 64   ;;  %s5334_s30 = smov 4  }
  0x72   : > { %4748 = dma.hbm_to_vmem [thread:$0]  (!%p5447_p11), %s6341_s4, 1024, %s276_s6, [#allocation15], %s5333_s7, %s5333_s7, %s5334_s30  }
  0x73   : > { %s34_s18 = sadd.s32 1, %s5319_s28  ;;  %s46_s15 = sadd.s32 1, %s5311_s26 }
  0x74   : > { %p35_p13 = scmp.ge.s32.totalorder %s34_s18, 2  ;;  %p53_p1 = scmp.ne.s32.totalorder %s5311_s26, %s5307_s25 }
  0x75   : > { %p54_p2 = scmp.eq.s32.totalorder %s5323_s29, 0  ;;  %p4761_p4 = scmp.lt.s32.totalorder %s5323_s29, 2 }
  0x76   : > { %s6424_s18 = smov (%p35_p13, %s34_s18), 0  ;;  %p6382_p8 = scmp.ne.s32.totalorder %s6375_s10, 0 }
  0x77   : > { %p55_p6 = por %p54_p2, %p53_p1  ;;  %s41_s5 = ssub.s32 %s5319_s28, %s6424_s18 }
  0x78   : > { %p5542_p10 = por %p6382_p8, %p53_p1  ;;  %s295_s24 = sand.u32 1, %s5311_s26  }
  0x79   : > { %p44_p12 = scmp.eq.s32.totalorder %s41_s5, 0  ;;  %s3893_s6 = sshll.u32 %s295_s24, 5 }
  0x7a   : > { %s4330_s19 = sshll.u32 %s5319_s28, 9  ;;  %s299_s10 = scalar_lea.vmem [#allocation8], %s3893_s6 }
  0x7b   : > { %s5551_s20 = scalar_select %p44_p12, %s5311_s26, %s46_s15  }
  0x7c   : > { %s5556_s23 = scalar_lea.hbm %s6337_s0, %s4330_s19  ;;  %s309_s14 = sshll.u32 %s299_s10, 4  ;;  %s5564_s14 = int_to_ptr.vmem [resolvable:$true] %s309_s14 }
  0x7d   : > { %p5560_p11 = pnand %p4761_p4, %p55_p6  ;;  %s5566_s12 = scalar_lea.sflag [#allocation9], %s295_s24 }
  0x7e   : > { %s5203_s17 = scalar_lea.hbm %s5556_s23, 512  ;;  %s5208_s6 = scalar_lea.hbm %s6337_s0, 1024 }
  0x7f   : > { %p5204_p0 = scmp.ne.s32.totalorder %s5556_s23, %s5203_s17  ;;  %p5205_p3 = pneg %p5560_p11 }
  0x80   : > { %p5209_p9 = scmp.lt.u32.totalorder %s5556_s23, %s6337_s0  ;;  %p5210_p13 = scmp.lt.u32.totalorder %s5208_s6, %s5203_s17 }
  0x81   : > { %p5206_p5 = pnand %p5205_p3, %p5204_p0  ;;  %p5212_p2 = scmp.lt.u32.totalorder %s5203_s17, %s5556_s23 }
  0x82   : > { %p5211_p1 = por %p5210_p13, %p5209_p9 }
  0x83   : > { %p5207_p7 = pneg %p5206_p5 }
  0x84   : > { %p5213_p4 = por %p5212_p2, %p5211_p1 }
  0x86   : > { %p5214_p6 = pnand %p5213_p4, %p5207_p7 }
  0x88   : > { %5217 = shalt.err (!%p5214_p6)
}
  0x89   : > { %s5218_s24 = scalar_lea.vmem %s5564_s14, 512  ;;  %s5335_s21 = smov [#allocation8]  }
  0x8a   : > { %p5219_p8 = scmp.ne.s32.totalorder %s5564_s14, %s5218_s24  ;;  %s5223_s10 = sshll.u32 %s5335_s21, 4  ;;  %s5224_s10 = int_to_ptr.vmem [resolvable:$false] %s5223_s10 }
  0x8b   : > { %s5225_s15 = scalar_lea.vmem %s5224_s10, 1024  ;;  %p5226_p5 = scmp.lt.s32.totalorder %s5564_s14, %s5224_s10 }
  0x8c   : > { %p5221_p12 = pnand %p5219_p8, %p5205_p3  ;;  %p5227_p9 = scmp.lt.s32.totalorder %s5225_s15, %s5218_s24 }
  0x8e   : > { %p5222_p0 = pneg %p5221_p12  ;;  %p5228_p13 = por %p5227_p9, %p5226_p5 }
  0x90   : > { %p5229_p1 = pnand %p5228_p13, %p5222_p0 }
  0x92   : > { %5232 = shalt.err (!%p5229_p1)
}
  0x93   : > { %4752 = dma.hbm_to_vmem [thread:$0]  (!%p5560_p11), %s5556_s23, 512, %s5564_s14, %s5566_s12, %s5333_s7, %s5333_s7, %s5334_s30  }
  0x94   : > { %p6385_p3 = scmp.ne.s32.totalorder %s6379_s13, 0 }
  0x96   : > { %321 = sbr.rel (%p6385_p3) target bundleno = 3193 (0xc79), region = 48 }
  0x9d   : > { %s5600_s17 = sand.u32 1, %s5307_s25   ;;  %p6386_p7 = scmp.ne.s32.totalorder %s6376_s11, 0 }
  0x9e   : > { %s3898_s5 = sshll.u32 %s5600_s17, 5  ;;  %s324_s6 = scalar_lea.sflag [#allocation9], %s5600_s17 }
  0x9f   : > { %s5604_s19 = scalar_lea.vmem [#allocation8], %s3898_s5 }
  0xa0   : > { %5286 = dma.done.wait (%p6386_p7), %s324_s6, 512  }
  0xa1   : > { %5288 = vsyncadd (%p6386_p7), %s324_s6, 4294966784  ;;  %p6387_p11 = scmp.ne.s32.totalorder %s6374_s9, 0 }
  0xa3   : > { %5290 = dma.done.wait (%p6387_p11), [#allocation12], 5120  }
  0xa4   : > { %5292 = vsyncadd (%p6387_p11), [#allocation12], 4294962176 }
  0xa5   : > { %5294 = dma.done.wait (%p6387_p11), [#allocation15], 4096  }
  0xa6   : > { %5296 = vsyncadd (%p6387_p11), [#allocation15], 4294963200  ;;  %s5618_s13 = scalar_lea.vmem [#allocation17], %s3898_s5  ;;  %p3904_p2 = scmp.ne.s32.totalorder %s5315_s27, 0 }
  0xa7   : > { %v5336_v0 = vmov (!%p3904_p2), 0.0  }
  0xa8   : > { %382 = sbr.rel (%p3904_p2) target bundleno = 176 (0xb0), region = 72  ;;  %383 = vst [vmem:[#allocation2] sm:$0xff] (!%p3904_p2), %v5336_v0  ;;  %384 = vst [vmem:[#allocation2 + $0x8] sm:$0xff] (!%p3904_p2), %v5336_v0 }
  0xa9   : > { %385 = vst [vmem:[#allocation2 + $0x10] sm:$0xff] (!%p3904_p2), %v5336_v0  ;;  %386 = vst [vmem:[#allocation2 + $0x18] sm:$0xff] (!%p3904_p2), %v5336_v0 }
  0xaa   : > { %387 = vst [vmem:[#allocation3] sm:$0xff] (!%p3904_p2), %v5336_v0  ;;  %388 = vst [vmem:[#allocation3 + $0x8] sm:$0xff] (!%p3904_p2), %v5336_v0 }
  0xab   : > { %389 = vst [vmem:[#allocation3 + $0x10] sm:$0xff] (!%p3904_p2), %v5336_v0  ;;  %390 = vst [vmem:[#allocation3 + $0x18] sm:$0xff] (!%p3904_p2), %v5336_v0 }
  0xac   : > { %391 = vst [vmem:[#allocation4] sm:$0xff] (!%p3904_p2), %v5336_v0  ;;  %392 = vst [vmem:[#allocation4 + $0x8] sm:$0xff] (!%p3904_p2), %v5336_v0 }
  0xad   : > { %393 = vst [vmem:[#allocation5] sm:$0xff] (!%p3904_p2), %v5336_v0  ;;  %394 = vst [vmem:[#allocation5 + $0x8] sm:$0xff] (!%p3904_p2), %v5336_v0 }
  0xae   : > { %395 = vst [vmem:[#allocation6] sm:$0xff] (!%p3904_p2), %v5336_v0  ;;  %396 = vst [vmem:[#allocation6 + $0x8] sm:$0xff] (!%p3904_p2), %v5336_v0 }
  0xaf   : > { %397 = vst [vmem:[#allocation7] sm:$0xff] %v5336_v0  ;;  %398 = vst [vmem:[#allocation7 + $0x8] sm:$0xff] %v5336_v0 }
  0xb0 PF: > { %v4832_v1 = vld [vmem:[#allocation11 + $0x4] ss:$8 sps:$4 sm:$0xff]   ;;  %v4834_v2 = vld [vmem:[#allocation11] ss:$8 sps:$4 sm:$0xff]   ;;  %v6356_v3 = vmov 0   ;;  %v6354_v4 = vmov 0.0  }
  0xb1   : > { %565 = vmatprep.mubr.bf16.mxu0 %v6356_v3  ;;  %4464 = vmatprep.subr.bf16.mxu1 %v6354_v4  ;;  %v4835_v5 = vld [vmem:[#allocation11 + $0x14] ss:$8 sps:$4 sm:$0xff]   ;;  %v4837_v6 = vld [vmem:[#allocation11 + $0x10] ss:$8 sps:$4 sm:$0xff]   ;;  %v4838_v7 = vld [vmem:[#allocation11 + $0x24] ss:$8 sps:$4 sm:$0xff]  }
  0xb2   : > { %533 = vmatprep.subr.bf16.mxu0 %v4832_v1  ;;  %v4840_v8 = vld [vmem:[#allocation11 + $0x20] ss:$8 sps:$4 sm:$0xff]   ;;  %v4841_v9 = vld [vmem:[#allocation11 + $0x34] ss:$8 sps:$4 sm:$0xff]   ;;  %v4843_v10 = vld [vmem:[#allocation11 + $0x30] ss:$8 sps:$4 sm:$0xff]  }
  0xb3   : > { %534 = vmatpush1.bf16.msra.mxu0 %v4834_v2  ;;  %v4844_v11 = vld [vmem:[#allocation11 + $0x44] ss:$8 sps:$4 sm:$0xff]   ;;  %v4846_v14 = vld [vmem:[#allocation11 + $0x40] ss:$8 sps:$4 sm:$0xff]   ;;  %v4847_v15 = vld [vmem:[#allocation11 + $0x54] ss:$8 sps:$4 sm:$0xff]  }
  0xb4   : > { %535 = vmatprep.subr.bf16.mxu0 %v4835_v5  ;;  %v4857_v12 = vld [vmem:[#allocation16] sm:$0xff]   ;;  %v4858_v13 = vld [vmem:[#allocation16 + $0x8] sm:$0xff]   ;;  %v4849_v16 = vld [vmem:[#allocation11 + $0x50] ss:$8 sps:$4 sm:$0xff]   ;;  %vm5339_vm0 = vmmov 0   ;;  %s6388_s7 = sld [smem:[#allocation34_spill]] }
  0xb5   : > { %4465 = vmatpush3.bf16.msra.mxu1 %v4857_v12  ;;  %v4859_v17 = vld [vmem:[#allocation16 + $0x10] sm:$0xff]   ;;  %v4850_v18 = vld [vmem:[#allocation11 + $0x64] ss:$8 sps:$4 sm:$0xff]   ;;  %v4860_v19 = vld [vmem:[#allocation16 + $0x18] sm:$0xff]   ;;  %4480 = vmatprep.mubr.msk.bf16.mxu1 %vm5339_vm0, %v6354_v4  ;;  %v6358_v1 = vmov 1.0|1.0  }
  0xb6   : > { %4466 = vmatprep.subr.bf16.mxu1 %v6354_v4  ;;  %v5625_v20 = vld [vmem:[#allocation11 + $0x60] ss:$8 sps:$4 sm:$0xff]   ;;  %v5627_v21 = vld [vmem:[#allocation11 + $0x74] ss:$8 sps:$4 sm:$0xff]   ;;  %v5630_v23 = vld [vmem:[#allocation11 + $0x70] ss:$8 sps:$4 sm:$0xff]  }
  0xb7   : > { %536 = vmatpush1.bf16.msra.mxu0 %v4837_v6  ;;  %v4861_v22 = vld [vmem:[#allocation16 + $0x20] sm:$0xff]   ;;  %v4862_v25 = vld [vmem:[#allocation16 + $0x28] sm:$0xff]   ;;  %v4863_v26 = vld [vmem:[#allocation16 + $0x30] sm:$0xff]   ;;  %s6390_s14 = sld [smem:[#allocation35_spill]]  ;;  %s4340_s21 = sshll.u32 %s5315_s27, 9 }
  0xb8   : > { %537 = vmatprep.subr.bf16.mxu0 %v4838_v7  ;;  %v4856_v24 = vld [vmem:[%s5604_s19] sm:$0xff]   ;;  %v4864_v27 = vld [vmem:[#allocation16 + $0x38] sm:$0xff]   ;;  %v5664_v35 = vld [vmem:[#allocation14 + $0x48] ss:$12 sps:$4 sm:$0xff]   ;;  %s3760_s10 = sshll.u32 %s5618_s13, 4  ;;  %s6413_s6 = sld [smem:[#allocation36_spill]]  ;;  %s6287_s10 = int_to_ptr.vmem [resolvable:$true] %s3760_s10 }
  0xb9   : > { %4467 = vmatpush3.bf16.msra.mxu1 %v4858_v13  ;;  %v5644_v28 = vld [vmem:[#allocation14] ss:$12 sps:$4 sm:$0xff]   ;;  %v5646_v29 = vld [vmem:[#allocation14 + $0x4] ss:$12 sps:$4 sm:$0xff]   ;;  %v5648_v30 = vld [vmem:[#allocation14 + $0x1c] ss:$12 sps:$4 sm:$0xff]  }
  0xba   : > { %4468 = vmatprep.subr.bf16.mxu1 %v6354_v4  ;;  %v5652_v31 = vld [vmem:[#allocation14 + $0x18] ss:$12 sps:$4 sm:$0xff]   ;;  %v5655_v32 = vld [vmem:[#allocation14 + $0x34] ss:$12 sps:$4 sm:$0xff]   ;;  %v5658_v33 = vld [vmem:[#allocation14 + $0x30] ss:$12 sps:$4 sm:$0xff]  }
  0xbb   : > { %538 = vmatpush1.bf16.msra.mxu0 %v4840_v8  ;;  %v5661_v34 = vld [vmem:[#allocation14 + $0x4c] ss:$12 sps:$4 sm:$0xff]   ;;  %v5667_v36 = vld [vmem:[#allocation14 + $0x64] ss:$12 sps:$4 sm:$0xff]   ;;  %v5673_v38 = vld [vmem:[#allocation14 + $0x7c] ss:$12 sps:$4 sm:$0xff]  }
  0xbc   : > { %539 = vmatprep.subr.bf16.mxu0 %v4841_v9  ;;  %v5670_v37 = vld [vmem:[#allocation14 + $0x60] ss:$12 sps:$4 sm:$0xff]   ;;  %v5676_v39 = vld [vmem:[#allocation14 + $0x78] ss:$12 sps:$4 sm:$0xff]   ;;  %v415_v44 = vld [vmem:[#allocation2 + $0x10] sm:$0xff]  ;;  %s3744_s27 = scalar_lea.sflag [#allocation10], %s5600_s17 }
  0xbd   : > { %4469 = vmatpush3.bf16.msra.mxu1 %v4859_v17  ;;  %v413_v40 = vld [vmem:[#allocation2] sm:$0xff]  ;;  %v419_v48 = vld [vmem:[#allocation3 + $0x10] sm:$0xff]  ;;  %v422_v49 = vld [vmem:[#allocation4 + $0x8] sm:$0xff]  ;;  %s5233_s9 = scalar_lea.vmem %s6287_s10, 512  ;;  %s5341_s11 = smov [#allocation17]  }
  0xbe   : > { %4470 = vmatprep.subr.bf16.mxu1 %v6354_v4  ;;  %v417_v41 = vld [vmem:[#allocation3] sm:$0xff]  ;;  %v583_v57 = vmul.f32 0.9, %v422_v49  ;;  %v4868_v62 = vld [vmem:[#allocation14 + $0x8] ss:$12 sps:$4 sm:$0xff]   ;;  %p5234_p4 = scmp.ne.s32.totalorder %s6287_s10, %s5233_s9  ;;  %s5237_s30 = sshll.u32 %s5341_s11, 4  ;;  %s5238_s30 = int_to_ptr.vmem [resolvable:$false] %s5237_s30 }
  0xbf   : > { %540 = vmatpush1.bf16.msra.mxu0 %v4843_v10  ;;  %v421_v42 = vld [vmem:[#allocation4] sm:$0xff]  ;;  %v4880_v7 = vld [vmem:[#allocation14 + $0x50] ss:$12 sps:$4 sm:$0xff]   ;;  %v4884_v8 = vld [vmem:[#allocation14 + $0x68] ss:$12 sps:$4 sm:$0xff]   ;;  %s5239_s23 = scalar_lea.vmem %s5238_s30, 1024  ;;  %p5240_p12 = scmp.lt.s32.totalorder %s6287_s10, %s5238_s30 }
  0xc0   : > { %541 = vmatprep.subr.bf16.mxu0 %v4844_v11  ;;  %v5685_v47 = vld [vmem:[%s6388_s7] ss:$0 sm:$0xff]  ;;  %v582_v52 = vmul.f32 0.9, %v421_v42  ;;  %v4876_v6 = vld [vmem:[#allocation14 + $0x38] ss:$12 sps:$4 sm:$0xff]   ;;  %p5235_p6 = pnand %p5234_p4, %p5542_p10  ;;  %p5241_p0 = scmp.lt.s32.totalorder %s5239_s23, %s5233_s9 }
  0xc1   : > { %4471 = vmatpush3.bf16.msra.mxu1 %v4860_v19  ;;  %v4872_v5 = vld [vmem:[#allocation14 + $0x20] ss:$12 sps:$4 sm:$0xff]   ;;  %v5706_v11 = vld [vmem:[#allocation14 + $0x90] ss:$12 sps:$4 sm:$0xff]   ;;  %v4892_v12 = vld [vmem:[#allocation14 + $0x98] ss:$12 sps:$4 sm:$0xff]  }
  0xc2   : > { %4472 = vmatprep.subr.bf16.mxu1 %v6354_v4  ;;  %v4888_v9 = vld [vmem:[#allocation14 + $0x80] ss:$12 sps:$4 sm:$0xff]   ;;  %v423_v17 = vld [vmem:[#allocation5] sm:$0xff]  ;;  %v424_v19 = vld [vmem:[#allocation5 + $0x8] sm:$0xff]  ;;  %p5236_p8 = pneg %p5235_p6  ;;  %p5242_p5 = por %p5241_p0, %p5240_p12 }
  0xc3   : > { %542 = vmatpush1.bf16.msra.mxu0 %v4846_v14  ;;  %v5704_v10 = vld [vmem:[#allocation14 + $0x94] ss:$12 sps:$4 sm:$0xff]   ;;  %v5710_v13 = vld [vmem:[#allocation14 + $0xac] ss:$12 sps:$4 sm:$0xff]  }
  0xc4   : > { %543 = vmatprep.subr.bf16.mxu0 %v4847_v15  ;;  %v5713_v14 = vld [vmem:[#allocation14 + $0xa8] ss:$12 sps:$4 sm:$0xff]   ;;  %v4896_v15 = vld [vmem:[#allocation14 + $0xb0] ss:$12 sps:$4 sm:$0xff]   ;;  %v5721_v49 = vld [vmem:[#allocation13] ss:$12 sps:$4 sm:$0xff]   ;;  %p5243_p9 = pnand %p5242_p5, %p5236_p8 }
  0xc5   : > { %4473 = vmatpush3.bf16.msra.mxu1 %v4861_v22  ;;  %v704_v22 = vmul.f32 0.9, %v423_v17  ;;  %v5771_v17 = vld [vmem:[#allocation13 + $0x90] ss:$12 sps:$4 sm:$0xff]  }
  0xc6   : > { %4474 = vmatprep.subr.bf16.mxu1 %v6354_v4 }
  0xc7   : > { %544 = vmatpush1.bf16.msra.mxu0 %v4849_v16  ;;  %v5718_v16 = vld [vmem:[#allocation13 + $0x4] ss:$12 sps:$4 sm:$0xff]  }
  0xc8   : > { %545 = vmatprep.subr.bf16.mxu0 %v4850_v18  ;;  %v418_v18 = vld [vmem:[#allocation3 + $0x8] sm:$0xff] }
  0xc9   : > { %4475 = vmatpush3.bf16.msra.mxu1 %v4862_v25  ;;  %v420_v25 = vld [vmem:[#allocation3 + $0x18] sm:$0xff] }
  0xca   : > { %4476 = vmatprep.subr.bf16.mxu1 %v6354_v4 }
  0xcb   : > { %546 = vmatpush1.bf16.msra.mxu0 %v5625_v20 }
  0xcc   : > { %547 = vmatprep.subr.bf16.mxu0 %v5627_v21 }
  0xcd   : > { %4477 = vmatpush3.bf16.msra.mxu1 %v4863_v26 }
  0xce   : > { %4478 = vmatprep.subr.bf16.mxu1 %v6354_v4 }
  0xcf   : > { %548 = vmatpush1.bf16.msra.mxu0 %v5630_v23 }
  0xd0   : > { %879 = vmatprep.subr.bf16.mxu0 %v5646_v29 }
  0xd1   : > { %4479 = vmatpush3.bf16.msra.mxu1 %v4864_v27 }
  0xd2   : > { %566 = vmatmul.mubr.bf16.vlgmr.msra.gmra.mrb[0].mxu0 %v4856_v24  ;;  %4484 = vmatprep.subr.bf16.mxu1 %v6354_v4 }
  0xd3   : > { %911 = vmatprep.mubr.bf16.mxu0 %v6356_v3  ;;  %880 = vmatpush1.bf16.msra.mxu0 %v5644_v28 }
  0xd4   : > { %881 = vmatprep.subr.bf16.mxu0 %v5648_v30 }
  0xd7   : > { %882 = vmatpush1.bf16.msra.mxu0 %v5652_v31 }
  0xd8   : > { %883 = vmatprep.subr.bf16.mxu0 %v5655_v32 }
  0xdb   : > { %884 = vmatpush1.bf16.msra.mxu0 %v5658_v33 }
  0xdc   : > { %885 = vmatprep.subr.bf16.mxu0 %v5661_v34 }
  0xdf   : > { %886 = vmatpush1.bf16.msra.mxu0 %v5664_v35 }
  0xe0   : > { %887 = vmatprep.subr.bf16.mxu0 %v5667_v36 }
  0xe3   : > { %888 = vmatpush1.bf16.msra.mxu0 %v5670_v37 }
  0xe4   : > { %889 = vmatprep.subr.bf16.mxu0 %v5673_v38 }
  0xe7   : > { %890 = vmatpush1.bf16.msra.mxu0 %v5676_v39 }
  0xe8   : > { %891 = vmatprep.subr.bf16.mxu0 %v5704_v10 }
  0xeb   : > { %892 = vmatpush1.bf16.msra.mxu0 %v5706_v11 }
  0xec   : > { %893 = vmatprep.subr.bf16.mxu0 %v5710_v13 }
  0xef   : > { %894 = vmatpush1.bf16.msra.mxu0 %v5713_v14 }
  0xf0   : > { %1142 = vmatprep.subr.bf16.mxu0 %v5718_v16 }
 0x1a5   : > { %v567_v43 = vpop.f32.mrb[0].mxu0 }
 0x1a6   : > { %v576_v45 = vadd.f32 %v567_v43, %v413_v40  ;;  %v5680_v46 = vpop.f32.mrb[1].mxu0  ;;  %v705_v40 = vmul.f32 0.9, %v424_v19  ;;  %v5775_v19 = vld [vmem:[#allocation13 + $0xac] ss:$12 sps:$4 sm:$0xff]  }
 0x1a7   : > { %v571_v50 = vpop.f32.mrb[2].mxu0 }
 0x1a8   : > { %v578_v51 = vadd.f32 %v576_v45, %v417_v41  ;;  %v577_v53 = vadd.f32 %v571_v50, %v415_v44  ;;  %v5687_v54 = vpop.f32.mrb[3].mxu0  ;;  %v4900_v50 = vld [vmem:[#allocation13 + $0x8] ss:$12 sps:$4 sm:$0xff]  }
 0x1aa   : > { %v580_v55 = vadd.f32 %v5685_v47, %v578_v51  ;;  %v579_v56 = vadd.f32 %v577_v53, %v419_v48 }
 0x1ac   : > { %v584_v58 = vadd.f32 %v582_v52, %v580_v55  ;;  %v581_v59 = vadd.f32 %v5685_v47, %v579_v56  ;;  %v5723_v52 = vld [vmem:[#allocation13 + $0x1c] ss:$12 sps:$4 sm:$0xff]   ;;  %v5732_v56 = vld [vmem:[#allocation13 + $0x18] ss:$12 sps:$4 sm:$0xff]  }
 0x1ae   : > { %v3924_v60 = vadd.f32 -1.0, %v584_v58  ;;  %v585_v61 = vadd.f32 %v583_v57, %v581_v59  ;;  %vm586_vm1 = vcmp.gt.f32.partialorder %v584_v58, 1.0  ;;  %v4904_v57 = vld [vmem:[#allocation13 + $0x20] ss:$12 sps:$4 sm:$0xff]   ;;  %v5742_v59 = vld [vmem:[#allocation13 + $0x30] ss:$12 sps:$4 sm:$0xff]  }
 0x1b0   : > { %v3925_v63 = vadd.f32 -1.0, %v585_v61  ;;  %vm587_vm2 = vcmp.gt.f32.partialorder %v585_v61, 1.0  ;;  %v5691_v0 = vsel %vm586_vm1, %v3924_v60, %v584_v58  ;;  %v5736_v58 = vld [vmem:[#allocation13 + $0x34] ss:$12 sps:$4 sm:$0xff]   ;;  %v4908_v60 = vld [vmem:[#allocation13 + $0x38] ss:$12 sps:$4 sm:$0xff]  }
 0x1b1   : > { %vm3936_vm3 = vmpackc.low %vm587_vm2, %vm586_vm1 }
 0x1b2   : > { %4481 = vmatmul.mubr.msk.bf16.vlgmr.msra.gmra.mrb[0].mxu1 %vm3936_vm3, %v6358_v1  ;;  %v5694_v2 = vsel %vm587_vm2, %v3925_v63, %v585_v61  ;;  %v5746_v61 = vld [vmem:[#allocation13 + $0x4c] ss:$12 sps:$4 sm:$0xff]   ;;  %v4912_v63 = vld [vmem:[#allocation13 + $0x50] ss:$12 sps:$4 sm:$0xff]  }
 0x1b3   : > { %4485 = vmatpush3.bf16.msra.mxu1 %v4868_v62  ;;  %4500 = vmatprep.mubr.msk.bf16.mxu1 %vm5339_vm0, %v6354_v4  ;;  %v5749_v62 = vld [vmem:[#allocation13 + $0x48] ss:$12 sps:$4 sm:$0xff]  }
 0x1b4   : > { %4486 = vmatprep.subr.bf16.mxu1 %v6354_v4 }
 0x1b7   : > { %4487 = vmatpush3.bf16.msra.mxu1 %v4872_v5  ;;  %v5753_v5 = vld [vmem:[#allocation13 + $0x64] ss:$12 sps:$4 sm:$0xff]  }
 0x1b8   : > { %4488 = vmatprep.subr.bf16.mxu1 %v6354_v4 }
 0x1bb   : > { %4489 = vmatpush3.bf16.msra.mxu1 %v4876_v6  ;;  %v5756_v6 = vld [vmem:[#allocation13 + $0x60] ss:$12 sps:$4 sm:$0xff]  }
 0x1bc   : > { %4490 = vmatprep.subr.bf16.mxu1 %v6354_v4 }
 0x1bf   : > { %4491 = vmatpush3.bf16.msra.mxu1 %v4880_v7  ;;  %v4916_v7 = vld [vmem:[#allocation13 + $0x68] ss:$12 sps:$4 sm:$0xff]  }
 0x1c0   : > { %4492 = vmatprep.subr.bf16.mxu1 %v6354_v4 }
 0x1c3   : > { %4493 = vmatpush3.bf16.msra.mxu1 %v4884_v8  ;;  %v5760_v8 = vld [vmem:[#allocation13 + $0x7c] ss:$12 sps:$4 sm:$0xff]  }
 0x1c4   : > { %4494 = vmatprep.subr.bf16.mxu1 %v6354_v4 }
 0x1c7   : > { %4495 = vmatpush3.bf16.msra.mxu1 %v4888_v9  ;;  %v5763_v9 = vld [vmem:[#allocation13 + $0x78] ss:$12 sps:$4 sm:$0xff]  }
 0x1c8   : > { %4496 = vmatprep.subr.bf16.mxu1 %v6354_v4 }
 0x1cb   : > { %4497 = vmatpush3.bf16.msra.mxu1 %v4892_v12  ;;  %v4920_v12 = vld [vmem:[#allocation13 + $0x80] ss:$12 sps:$4 sm:$0xff]  }
 0x1cc   : > { %4498 = vmatprep.subr.bf16.mxu1 %v6354_v4 }
 0x1cf   : > { %4499 = vmatpush3.bf16.msra.mxu1 %v4896_v15  ;;  %v5769_v15 = vld [vmem:[#allocation13 + $0x94] ss:$12 sps:$4 sm:$0xff]  }
 0x1d0   : > { %4504 = vmatprep.subr.bf16.mxu1 %v6354_v4 }
 0x285   : > { %v695_v24 = vpop.f32.mrb[0].mxu1 }
 0x286   : > { %v702_v26 = vadd.f32 %v695_v24, %v418_v18  ;;  %v4482_v27 = vpop.f32.mrb[1].mxu1  ;;  %v4924_v18 = vld [vmem:[#allocation13 + $0x98] ss:$12 sps:$4 sm:$0xff]   ;;  %v4928_v24 = vld [vmem:[#allocation13 + $0xb0] ss:$12 sps:$4 sm:$0xff]  }
 0x287   : > { %v698_v41 = vpop.f32.mrb[2].mxu1  ;;  %v425_v27 = vld [vmem:[#allocation6] sm:$0xff] }
 0x288   : > { %v706_v42 = vadd.f32 %v704_v22, %v702_v26  ;;  %v703_v43 = vadd.f32 %v698_v41, %v420_v25  ;;  %v4483_v44 = vpop.f32.mrb[3].mxu1  ;;  %v5777_v22 = vld [vmem:[#allocation13 + $0xa8] ss:$12 sps:$4 sm:$0xff]   ;;  %v5076_v25 = vld [vmem:[#allocation11 + $0x4] ss:$8 sps:$4 sm:$0xff]  }
 0x289   : > { %v414_v26 = vld [vmem:[#allocation2 + $0x8] sm:$0xff] }
 0x28a   : > { %v3938_v45 = vadd.f32 -1.0, %v706_v42  ;;  %v707_v48 = vadd.f32 %v705_v40, %v703_v43  ;;  %vm708_vm4 = vcmp.gt.f32.partialorder %v706_v42, 1.0  ;;  %v416_v40 = vld [vmem:[#allocation2 + $0x18] sm:$0xff]  ;;  %v426_v41 = vld [vmem:[#allocation6 + $0x8] sm:$0xff]  ;;  %v967_v43 = vmul.f32 0.9, %v425_v27 }
 0x28c   : > { %v3939_v51 = vadd.f32 -1.0, %v707_v48  ;;  %vm709_vm5 = vcmp.gt.f32.partialorder %v707_v48, 1.0  ;;  %v5725_v53 = vsel %vm708_vm4, %v3938_v45, %v706_v42  ;;  %v963_v42 = vadd.f32 %v5680_v46, %v414_v26 }
 0x28d   : > { %vm3966_vm6 = vmpackc.low %vm709_vm5, %vm708_vm4 }
 0x28e   : > { %3967 = vmatmul.mubr.msk.bf16.vlgmr.msra.gmra.mrb[4].mxu0 %vm3966_vm6, %v6358_v1  ;;  %4501 = vmatmul.mubr.msk.bf16.vlgmr.msra.gmra.mrb[4].mxu1 %vm3966_vm6, %v6358_v1  ;;  %v5729_v55 = vsel %vm709_vm5, %v3939_v51, %v707_v48  ;;  %v964_v48 = vadd.f32 %v5687_v54, %v416_v40  ;;  %v5077_v40 = vld [vmem:[#allocation11] ss:$8 sps:$4 sm:$0xff]  }
 0x28f   : > { %1143 = vmatpush1.bf16.msra.mxu0 %v5721_v49  ;;  %4505 = vmatpush3.bf16.msra.mxu1 %v4900_v50 }
 0x290   : > { %1144 = vmatprep.subr.bf16.mxu0 %v5723_v52  ;;  %4506 = vmatprep.subr.bf16.mxu1 %v6354_v4 }
 0x291   : > { %1174 = vmatprep.mubr.bf16.mxu0 %v6356_v3  ;;  %4520 = vmatprep.mubr.msk.bf16.mxu1 %vm5339_vm0, %v6354_v4 }
 0x293   : > { %1145 = vmatpush1.bf16.msra.mxu0 %v5732_v56  ;;  %4507 = vmatpush3.bf16.msra.mxu1 %v4904_v57 }
 0x294   : > { %1146 = vmatprep.subr.bf16.mxu0 %v5736_v58  ;;  %4508 = vmatprep.subr.bf16.mxu1 %v6354_v4 }
 0x297   : > { %1147 = vmatpush1.bf16.msra.mxu0 %v5742_v59  ;;  %4509 = vmatpush3.bf16.msra.mxu1 %v4908_v60  ;;  %v968_v60 = vmul.f32 0.9, %v426_v41  ;;  %v5078_v41 = vld [vmem:[#allocation11 + $0x14] ss:$8 sps:$4 sm:$0xff]  }
 0x298   : > { %1148 = vmatprep.subr.bf16.mxu0 %v5746_v61  ;;  %4510 = vmatprep.subr.bf16.mxu1 %v6354_v4 }
 0x29b   : > { %1149 = vmatpush1.bf16.msra.mxu0 %v5749_v62  ;;  %4511 = vmatpush3.bf16.msra.mxu1 %v4912_v63 }
 0x29c   : > { %1150 = vmatprep.subr.bf16.mxu0 %v5753_v5  ;;  %4512 = vmatprep.subr.bf16.mxu1 %v6354_v4 }
 0x29f   : > { %1151 = vmatpush1.bf16.msra.mxu0 %v5756_v6  ;;  %4513 = vmatpush3.bf16.msra.mxu1 %v4916_v7 }
 0x2a0   : > { %1152 = vmatprep.subr.bf16.mxu0 %v5760_v8  ;;  %4514 = vmatprep.subr.bf16.mxu1 %v6354_v4 }
 0x2a3   : > { %1153 = vmatpush1.bf16.msra.mxu0 %v5763_v9  ;;  %4515 = vmatpush3.bf16.msra.mxu1 %v4920_v12 }
 0x2a4   : > { %4516 = vmatprep.subr.bf16.mxu1 %v6354_v4  ;;  %1154 = vmatprep.subr.bf16.mxu0 %v5769_v15 }
 0x2a7   : > { %1155 = vmatpush1.bf16.msra.mxu0 %v5771_v17  ;;  %4517 = vmatpush3.bf16.msra.mxu1 %v4924_v18 }
 0x2a8   : > { %4518 = vmatprep.subr.bf16.mxu1 %v6354_v4  ;;  %1156 = vmatprep.subr.bf16.mxu0 %v5775_v19 }
 0x2ab   : > { %1157 = vmatpush1.bf16.msra.mxu0 %v5777_v22  ;;  %4519 = vmatpush3.bf16.msra.mxu1 %v4928_v24 }
 0x2ac   : > { %1357 = vmatprep.subr.bf16.mxu0 %v5076_v25  ;;  %4524 = vmatprep.subr.bf16.mxu1 %v6354_v4 }
 0x361   : > { %v5784_v44 = vpop.f32.mrb[4].mxu0  ;;  %v956_v45 = vpop.f32.mrb[4].mxu1 }
 0x362   : > { %v965_v50 = vadd.f32 %v963_v42, %v956_v45  ;;  %v5787_v51 = vpop.f32.mrb[5].mxu0  ;;  %v4502_v57 = vpop.f32.mrb[5].mxu1  ;;  %v6389_v42 = vmov 0.0   ;;  %v5080_v45 = vld [vmem:[#allocation11 + $0x24] ss:$8 sps:$4 sm:$0xff]  }
 0x363   : > { %v5789_v63 = vpop.f32.mrb[6].mxu0  ;;  %v959_v7 = vpop.f32.mrb[6].mxu1  ;;  %v5083_v57 = vld [vmem:[#allocation11 + $0x30] ss:$8 sps:$4 sm:$0xff]  }
 0x364   : > { %v969_v12 = vadd.f32 %v967_v43, %v965_v50  ;;  %v966_v18 = vadd.f32 %v964_v48, %v959_v7  ;;  %v5791_v24 = vpop.f32.mrb[7].mxu0  ;;  %v4503_v25 = vpop.f32.mrb[7].mxu1  ;;  %v5079_v43 = vld [vmem:[#allocation11 + $0x10] ss:$8 sps:$4 sm:$0xff]   ;;  %v5081_v48 = vld [vmem:[#allocation11 + $0x20] ss:$8 sps:$4 sm:$0xff]  }
 0x365   : > { %v5082_v50 = vld [vmem:[#allocation11 + $0x34] ss:$8 sps:$4 sm:$0xff]   ;;  %v5085_v7 = vld [vmem:[#allocation11 + $0x40] ss:$8 sps:$4 sm:$0xff]   ;;  %v5088_v25 = vld [vmem:[#allocation11 + $0x64] ss:$8 sps:$4 sm:$0xff]  }
 0x366   : > { %v3970_v46 = vadd.f32 -1.0, %v969_v12  ;;  %v970_v26 = vadd.f32 %v968_v60, %v966_v18  ;;  %vm971_vm7 = vcmp.gt.f32.partialorder %v969_v12, 1.0  ;;  %v5084_v60 = vld [vmem:[#allocation11 + $0x44] ss:$8 sps:$4 sm:$0xff]   ;;  %v5087_v18 = vld [vmem:[#allocation11 + $0x50] ss:$8 sps:$4 sm:$0xff]  }
 0x368   : > { %v3971_v27 = vadd.f32 -1.0, %v970_v26  ;;  %vm972_vm8 = vcmp.gt.f32.partialorder %v970_v26, 1.0  ;;  %v5793_v4 = vsel %vm971_vm7, %v3970_v46, %v969_v12  ;;  %v5086_v12 = vld [vmem:[#allocation11 + $0x54] ss:$8 sps:$4 sm:$0xff]   ;;  %v4929_v46 = vld [vmem:[%s5604_s19 + $0x8] sm:$0xff]  }
 0x369   : > { %vm3998_vm9 = vmpackc.low %vm972_vm8, %vm971_vm7 }
 0x36a   : > { %3999 = vmatmul.mubr.msk.bf16.vlgmr.msra.gmra.mrb[8].mxu0 %vm3998_vm9, %v6358_v1  ;;  %4521 = vmatmul.mubr.msk.bf16.vlgmr.msra.gmra.mrb[8].mxu1 %vm3998_vm9, %v6358_v1  ;;  %v5797_v54 = vsel %vm972_vm8, %v3971_v27, %v970_v26 }
 0x36b   : > { %1358 = vmatpush1.bf16.msra.mxu0 %v5077_v40  ;;  %1389 = vmatprep.mubr.bf16.mxu0 %v6356_v3 }
 0x36c   : > { %1359 = vmatprep.subr.bf16.mxu0 %v5078_v41  ;;  %4540 = vmatprep.mubr.msk.bf16.mxu1 %vm5339_vm0, %v6389_v42 }
 0x36f   : > { %1360 = vmatpush1.bf16.msra.mxu0 %v5079_v43 }
 0x370   : > { %1361 = vmatprep.subr.bf16.mxu0 %v5080_v45 }
 0x373   : > { %1362 = vmatpush1.bf16.msra.mxu0 %v5081_v48 }
 0x374   : > { %1363 = vmatprep.subr.bf16.mxu0 %v5082_v50 }
 0x377   : > { %1364 = vmatpush1.bf16.msra.mxu0 %v5083_v57 }
 0x378   : > { %1365 = vmatprep.subr.bf16.mxu0 %v5084_v60 }
 0x37b   : > { %1366 = vmatpush1.bf16.msra.mxu0 %v5085_v7 }
 0x37c   : > { %1367 = vmatprep.subr.bf16.mxu0 %v5086_v12 }
 0x37f   : > { %1368 = vmatpush1.bf16.msra.mxu0 %v5087_v18 }
 0x380   : > { %1369 = vmatprep.subr.bf16.mxu0 %v5088_v25  ;;  %v1406_v25 = vmul.f32 0.9, %v5691_v0 }
 0x383   : > { %1370 = vmatpush1.bf16.msra.mxu0 %v5625_v20  ;;  %v4930_v20 = vld [vmem:[#allocation16] sm:$0xff]  }
 0x384   : > { %1371 = vmatprep.subr.bf16.mxu0 %v5627_v21  ;;  %4525 = vmatpush3.bf16.msra.mxu1 %v4930_v20  ;;  %v4931_v21 = vld [vmem:[#allocation16 + $0x8] sm:$0xff]  }
 0x385   : > { %4526 = vmatprep.subr.bf16.mxu1 %v6389_v42 }
 0x387   : > { %1372 = vmatpush1.bf16.msra.mxu0 %v5630_v23  ;;  %v4932_v23 = vld [vmem:[#allocation16 + $0x10] sm:$0xff]  }
 0x388   : > { %1703 = vmatprep.subr.bf16.mxu0 %v5646_v29  ;;  %4527 = vmatpush3.bf16.msra.mxu1 %v4931_v21  ;;  %v4934_v29 = vld [vmem:[#allocation16 + $0x20] sm:$0xff]  }
 0x389   : > { %4528 = vmatprep.subr.bf16.mxu1 %v6389_v42 }
 0x38a   : > { %1390 = vmatmul.mubr.bf16.vlgmr.msra.gmra.mrb[8].mxu0 %v4929_v46 }
 0x38b   : > { %1704 = vmatpush1.bf16.msra.mxu0 %v5644_v28  ;;  %1735 = vmatprep.mubr.bf16.mxu0 %v6356_v3  ;;  %v4933_v28 = vld [vmem:[#allocation16 + $0x18] sm:$0xff]  }
 0x38c   : > { %1705 = vmatprep.subr.bf16.mxu0 %v5648_v30  ;;  %4529 = vmatpush3.bf16.msra.mxu1 %v4932_v23  ;;  %v4935_v30 = vld [vmem:[#allocation16 + $0x28] sm:$0xff]  }
 0x38d   : > { %4530 = vmatprep.subr.bf16.mxu1 %v6389_v42 }
 0x38f   : > { %1706 = vmatpush1.bf16.msra.mxu0 %v5652_v31  ;;  %v4936_v31 = vld [vmem:[#allocation16 + $0x30] sm:$0xff]  }
 0x390   : > { %1707 = vmatprep.subr.bf16.mxu0 %v5655_v32  ;;  %4531 = vmatpush3.bf16.msra.mxu1 %v4933_v28  ;;  %v4937_v32 = vld [vmem:[#allocation16 + $0x38] sm:$0xff]   ;;  %v1407_v28 = vmul.f32 0.9, %v5694_v2 }
 0x391   : > { %4532 = vmatprep.subr.bf16.mxu1 %v6389_v42  ;;  %v4940_v2 = vld [vmem:[#allocation14 + $0x38] ss:$12 sps:$4 sm:$0xff]  }
 0x393   : > { %1708 = vmatpush1.bf16.msra.mxu0 %v5658_v33  ;;  %v427_v33 = vld [vmem:[#allocation7] sm:$0xff] }
 0x394   : > { %1709 = vmatprep.subr.bf16.mxu0 %v5661_v34  ;;  %4533 = vmatpush3.bf16.msra.mxu1 %v4934_v29  ;;  %v5835_v34 = vld [vmem:[%s6390_s14] ss:$0 sm:$0xff] }
 0x395   : > { %4534 = vmatprep.subr.bf16.mxu1 %v6389_v42 }
 0x397   : > { %1710 = vmatpush1.bf16.msra.mxu0 %v5664_v35  ;;  %v428_v35 = vld [vmem:[#allocation7 + $0x8] sm:$0xff] }
 0x398   : > { %1711 = vmatprep.subr.bf16.mxu0 %v5667_v36  ;;  %4535 = vmatpush3.bf16.msra.mxu1 %v4935_v30  ;;  %v1228_v36 = vmul.f32 0.9, %v427_v33  ;;  %v4941_v33 = vld [vmem:[#allocation14 + $0x50] ss:$12 sps:$4 sm:$0xff]  }
 0x399   : > { %4536 = vmatprep.subr.bf16.mxu1 %v6389_v42 }
 0x39b   : > { %1712 = vmatpush1.bf16.msra.mxu0 %v5670_v37 }
 0x39c   : > { %1713 = vmatprep.subr.bf16.mxu0 %v5673_v38  ;;  %4537 = vmatpush3.bf16.msra.mxu1 %v4936_v31 }
 0x39d   : > { %4538 = vmatprep.subr.bf16.mxu1 %v6389_v42 }
 0x39f   : > { %1714 = vmatpush1.bf16.msra.mxu0 %v5676_v39 }
 0x3a0   : > { %1715 = vmatprep.subr.bf16.mxu0 %v5704_v10  ;;  %4539 = vmatpush3.bf16.msra.mxu1 %v4937_v32  ;;  %v1229_v10 = vmul.f32 0.9, %v428_v35  ;;  %v4942_v35 = vld [vmem:[#allocation14 + $0x68] ss:$12 sps:$4 sm:$0xff]  }
 0x3a1   : > { %4544 = vmatprep.subr.bf16.mxu1 %v6389_v42 }
 0x3a3   : > { %1716 = vmatpush1.bf16.msra.mxu0 %v5706_v11 }
 0x3a4   : > { %1717 = vmatprep.subr.bf16.mxu0 %v5710_v13 }
 0x3a7   : > { %1718 = vmatpush1.bf16.msra.mxu0 %v5713_v14 }
 0x3a8   : > { %1966 = vmatprep.subr.bf16.mxu0 %v5718_v16 }
 0x43d   : > { %v1219_v37 = vpop.f32.mrb[8].mxu1 }
 0x43e   : > { %v1226_v38 = vadd.f32 %v5835_v34, %v1219_v37  ;;  %v4522_v39 = vpop.f32.mrb[9].mxu1  ;;  %v4944_v37 = vld [vmem:[#allocation14 + $0x98] ss:$12 sps:$4 sm:$0xff]  }
 0x43f   : > { %v1222_v11 = vpop.f32.mrb[10].mxu1 }
 0x440   : > { %v1230_v13 = vadd.f32 %v1228_v36, %v1226_v38  ;;  %v1227_v14 = vadd.f32 %v5835_v34, %v1222_v11  ;;  %v4523_v16 = vpop.f32.mrb[11].mxu1  ;;  %v4943_v36 = vld [vmem:[#allocation14 + $0x80] ss:$12 sps:$4 sm:$0xff]   ;;  %v4945_v38 = vld [vmem:[#allocation14 + $0xb0] ss:$12 sps:$4 sm:$0xff]  }
 0x441   : > { %v1528_v11 = vmul.f32 0.9, %v5725_v53 }
 0x442   : > { %v4002_v26 = vadd.f32 -1.0, %v1230_v13  ;;  %v1231_v27 = vadd.f32 %v1229_v10, %v1227_v14  ;;  %vm1232_vm10 = vcmp.gt.f32.partialorder %v1230_v13, 1.0 }
 0x443   : > { %v4004_v43 = vsel %vm1232_vm10, 1.0, %v6389_v42 }
 0x444   : > { %v4003_v40 = vadd.f32 -1.0, %v1231_v27  ;;  %v5839_v41 = vsel %vm1232_vm10, %v4002_v26, %v1230_v13  ;;  %vm1233_vm11 = vcmp.gt.f32.partialorder %v1231_v27, 1.0 }
 0x445   : > { %v4005_v45 = vsel %vm1233_vm11, 1.0, %v6389_v42 }
 0x446   : > { %v5843_v48 = vsel %vm1233_vm11, %v4003_v40, %v1231_v27  ;;  %v4342_v50 = vpack.c.bf16 %v4005_v45, %v4004_v43  ;;  %v1529_v27 = vmul.f32 0.9, %v5729_v55  ;;  %v4947_v55 = vld [vmem:[#allocation13 + $0x20] ss:$12 sps:$4 sm:$0xff]  }
 0x448   : > { %4343 = vst [vmem:[%s5618_s13] sm:$0xff] %v4342_v50   ;;  %v4946_v50 = vld [vmem:[#allocation13 + $0x8] ss:$12 sps:$4 sm:$0xff]  }
 0x45d   : > { %v1391_v57 = vpop.f32.mrb[8].mxu0 }
 0x45e   : > { %v1402_v60 = vadd.f32 %v1391_v57, %v5784_v44  ;;  %v5847_v7 = vpop.f32.mrb[9].mxu0  ;;  %v4938_v44 = vld [vmem:[#allocation14 + $0x8] ss:$12 sps:$4 sm:$0xff]  }
 0x45f   : > { %v1395_v12 = vpop.f32.mrb[10].mxu0 }
 0x460   : > { %v1404_v18 = vadd.f32 %v5685_v47, %v1402_v60  ;;  %v1403_v46 = vadd.f32 %v1395_v12, %v5789_v63  ;;  %v5852_v20 = vpop.f32.mrb[11].mxu0  ;;  %v4939_v63 = vld [vmem:[#allocation14 + $0x20] ss:$12 sps:$4 sm:$0xff]   ;;  %v1792_v12 = vmul.f32 0.9, %v5797_v54 }
 0x462   : > { %v1408_v21 = vadd.f32 %v1406_v25, %v1404_v18  ;;  %v1405_v23 = vadd.f32 %v5685_v47, %v1403_v46 }
 0x464   : > { %v4027_v29 = vadd.f32 -1.0, %v1408_v21  ;;  %v1409_v30 = vadd.f32 %v1407_v28, %v1405_v23  ;;  %vm1410_vm12 = vcmp.gt.f32.partialorder %v1408_v21, 1.0  ;;  %v5924_v23 = vld [vmem:[#allocation11 + $0x14] ss:$8 sps:$4 sm:$0xff]  }
 0x466   : > { %v4028_v31 = vadd.f32 -1.0, %v1409_v30  ;;  %vm1411_vm13 = vcmp.gt.f32.partialorder %v1409_v30, 1.0  ;;  %v5856_v32 = vsel %vm1410_vm12, %v4027_v29, %v1408_v21  ;;  %v5937_v29 = vld [vmem:[#allocation11 + $0x24] ss:$8 sps:$4 sm:$0xff]  }
 0x467   : > { %vm4039_vm14 = vmpackc.low %vm1411_vm13, %vm1410_vm12 }
 0x468   : > { %4541 = vmatmul.mubr.msk.bf16.vlgmr.msra.gmra.mrb[12].mxu1 %vm4039_vm14, %v6358_v1  ;;  %v5859_v0 = vsel %vm1411_vm13, %v4028_v31, %v1409_v30  ;;  %v5942_v30 = vld [vmem:[#allocation11 + $0x20] ss:$8 sps:$4 sm:$0xff]   ;;  %v5948_v31 = vld [vmem:[#allocation11 + $0x30] ss:$8 sps:$4 sm:$0xff]  }
 0x469   : > { %4545 = vmatpush3.bf16.msra.mxu1 %v4938_v44  ;;  %4560 = vmatprep.mubr.msk.bf16.mxu1 %vm5339_vm0, %v6389_v42  ;;  %v5945_v44 = vld [vmem:[#allocation11 + $0x34] ss:$8 sps:$4 sm:$0xff]  }
 0x46a   : > { %4546 = vmatprep.subr.bf16.mxu1 %v6389_v42 }
 0x46d   : > { %4547 = vmatpush3.bf16.msra.mxu1 %v4939_v63  ;;  %v5951_v63 = vld [vmem:[#allocation11 + $0x44] ss:$8 sps:$4 sm:$0xff]  }
 0x46e   : > { %4548 = vmatprep.subr.bf16.mxu1 %v6389_v42 }
 0x471   : > { %4549 = vmatpush3.bf16.msra.mxu1 %v4940_v2  ;;  %v5954_v2 = vld [vmem:[#allocation11 + $0x40] ss:$8 sps:$4 sm:$0xff]  }
 0x472   : > { %4550 = vmatprep.subr.bf16.mxu1 %v6389_v42 }
 0x475   : > { %4551 = vmatpush3.bf16.msra.mxu1 %v4941_v33  ;;  %v5957_v33 = vld [vmem:[#allocation11 + $0x54] ss:$8 sps:$4 sm:$0xff]  }
 0x476   : > { %4552 = vmatprep.subr.bf16.mxu1 %v6389_v42 }
 0x479   : > { %4553 = vmatpush3.bf16.msra.mxu1 %v4942_v35  ;;  %v5960_v35 = vld [vmem:[#allocation11 + $0x50] ss:$8 sps:$4 sm:$0xff]  }
 0x47a   : > { %4554 = vmatprep.subr.bf16.mxu1 %v6389_v42 }
 0x47d   : > { %4555 = vmatpush3.bf16.msra.mxu1 %v4943_v36  ;;  %v5963_v36 = vld [vmem:[#allocation11 + $0x64] ss:$8 sps:$4 sm:$0xff]  }
 0x47e   : > { %4556 = vmatprep.subr.bf16.mxu1 %v6389_v42 }
 0x481   : > { %4557 = vmatpush3.bf16.msra.mxu1 %v4944_v37  ;;  %v5966_v37 = vld [vmem:[#allocation11 + $0x60] ss:$8 sps:$4 sm:$0xff]  }
 0x482   : > { %4558 = vmatprep.subr.bf16.mxu1 %v6389_v42 }
 0x485   : > { %4559 = vmatpush3.bf16.msra.mxu1 %v4945_v38  ;;  %v5969_v38 = vld [vmem:[#allocation11 + $0x74] ss:$8 sps:$4 sm:$0xff]  }
 0x486   : > { %4564 = vmatprep.subr.bf16.mxu1 %v6389_v42 }
 0x53b   : > { %v1519_v39 = vpop.f32.mrb[12].mxu1 }
 0x53c   : > { %v1526_v10 = vadd.f32 %v1519_v39, %v5787_v51  ;;  %v4542_v13 = vpop.f32.mrb[13].mxu1  ;;  %v4948_v51 = vld [vmem:[#allocation13 + $0x38] ss:$12 sps:$4 sm:$0xff]  }
 0x53d   : > { %v1522_v14 = vpop.f32.mrb[14].mxu1  ;;  %v5972_v39 = vld [vmem:[#allocation11 + $0x70] ss:$8 sps:$4 sm:$0xff]   ;;  %v4980_v13 = vld [vmem:[#allocation16 + $0x8] sm:$0xff]  }
 0x53e   : > { %v1530_v16 = vadd.f32 %v1528_v11, %v1526_v10  ;;  %v1527_v26 = vadd.f32 %v1522_v14, %v5791_v24  ;;  %v4543_v40 = vpop.f32.mrb[15].mxu1  ;;  %v4978_v10 = vld [vmem:[%s5604_s19 + $0x10] sm:$0xff]   ;;  %v4979_v11 = vld [vmem:[#allocation16] sm:$0xff]  }
 0x53f   : > { %v4981_v14 = vld [vmem:[#allocation16 + $0x10] sm:$0xff]  }
 0x540   : > { %v4041_v43 = vadd.f32 -1.0, %v1530_v16  ;;  %v1531_v45 = vadd.f32 %v1529_v27, %v1527_v26  ;;  %vm1532_vm15 = vcmp.gt.f32.partialorder %v1530_v16, 1.0  ;;  %v4983_v26 = vld [vmem:[#allocation16 + $0x20] sm:$0xff]   ;;  %v4984_v27 = vld [vmem:[#allocation16 + $0x28] sm:$0xff]   ;;  %v4985_v40 = vld [vmem:[#allocation16 + $0x30] sm:$0xff]  }
 0x542   : > { %v4042_v57 = vadd.f32 -1.0, %v1531_v45  ;;  %vm1533_vm1 = vcmp.gt.f32.partialorder %v1531_v45, 1.0  ;;  %v5875_v60 = vsel %vm1532_vm15, %v4041_v43, %v1530_v16  ;;  %v4982_v16 = vld [vmem:[#allocation16 + $0x18] sm:$0xff]  }
 0x543   : > { %vm4069_vm2 = vmpackc.low %vm1533_vm1, %vm1532_vm15  ;;  %v4986_v43 = vld [vmem:[#allocation16 + $0x38] sm:$0xff]  }
 0x544   : > { %4070 = vmatmul.mubr.msk.bf16.vlgmr.msra.gmra.mrb[12].mxu0 %vm4069_vm2, %v6358_v1  ;;  %4561 = vmatmul.mubr.msk.bf16.vlgmr.msra.gmra.mrb[16].mxu1 %vm4069_vm2, %v6358_v1  ;;  %v5879_v53 = vsel %vm1533_vm1, %v4042_v57, %v1531_v45  ;;  %v5986_v45 = vld [vmem:[#allocation14] ss:$12 sps:$4 sm:$0xff]   ;;  %v5990_v57 = vld [vmem:[#allocation14 + $0x1c] ss:$12 sps:$4 sm:$0xff]  }
 0x545   : > { %1967 = vmatpush1.bf16.msra.mxu0 %v5721_v49  ;;  %4565 = vmatpush3.bf16.msra.mxu1 %v4946_v50  ;;  %v4949_v49 = vld [vmem:[#allocation13 + $0x50] ss:$12 sps:$4 sm:$0xff]  }
 0x546   : > { %1968 = vmatprep.subr.bf16.mxu0 %v5723_v52  ;;  %4566 = vmatprep.subr.bf16.mxu1 %v6389_v42  ;;  %v4950_v52 = vld [vmem:[#allocation13 + $0x68] ss:$12 sps:$4 sm:$0xff]   ;;  %v5988_v50 = vld [vmem:[#allocation14 + $0x4] ss:$12 sps:$4 sm:$0xff]  }
 0x547   : > { %1998 = vmatprep.mubr.bf16.mxu0 %v6356_v3  ;;  %4580 = vmatprep.mubr.msk.bf16.mxu1 %vm5339_vm0, %v6389_v42 }
 0x549   : > { %1969 = vmatpush1.bf16.msra.mxu0 %v5732_v56  ;;  %4567 = vmatpush3.bf16.msra.mxu1 %v4947_v55  ;;  %v4951_v56 = vld [vmem:[#allocation13 + $0x80] ss:$12 sps:$4 sm:$0xff]   ;;  %v5994_v55 = vld [vmem:[#allocation14 + $0x18] ss:$12 sps:$4 sm:$0xff]  }
 0x54a   : > { %1970 = vmatprep.subr.bf16.mxu0 %v5736_v58  ;;  %4568 = vmatprep.subr.bf16.mxu1 %v6389_v42  ;;  %v4952_v58 = vld [vmem:[#allocation13 + $0x98] ss:$12 sps:$4 sm:$0xff]  }
 0x54d   : > { %1971 = vmatpush1.bf16.msra.mxu0 %v5742_v59  ;;  %4569 = vmatpush3.bf16.msra.mxu1 %v4948_v51  ;;  %v4953_v59 = vld [vmem:[#allocation13 + $0xb0] ss:$12 sps:$4 sm:$0xff]   ;;  %v5997_v51 = vld [vmem:[#allocation14 + $0x34] ss:$12 sps:$4 sm:$0xff]  }
 0x54e   : > { %1972 = vmatprep.subr.bf16.mxu0 %v5746_v61  ;;  %4570 = vmatprep.subr.bf16.mxu1 %v6389_v42  ;;  %v5906_v61 = vld [vmem:[#allocation11 + $0x4] ss:$8 sps:$4 sm:$0xff]  }
 0x551   : > { %1973 = vmatpush1.bf16.msra.mxu0 %v5749_v62  ;;  %4571 = vmatpush3.bf16.msra.mxu1 %v4949_v49  ;;  %v6000_v49 = vld [vmem:[#allocation14 + $0x30] ss:$12 sps:$4 sm:$0xff]  }
 0x552   : > { %1974 = vmatprep.subr.bf16.mxu0 %v5753_v5  ;;  %4572 = vmatprep.subr.bf16.mxu1 %v6389_v42 }
 0x555   : > { %1975 = vmatpush1.bf16.msra.mxu0 %v5756_v6  ;;  %4573 = vmatpush3.bf16.msra.mxu1 %v4950_v52  ;;  %v6003_v52 = vld [vmem:[#allocation14 + $0x4c] ss:$12 sps:$4 sm:$0xff]  }
 0x556   : > { %1976 = vmatprep.subr.bf16.mxu0 %v5760_v8  ;;  %4574 = vmatprep.subr.bf16.mxu1 %v6389_v42  ;;  %v1791_v8 = vmul.f32 0.9, %v5793_v4 }
 0x559   : > { %1977 = vmatpush1.bf16.msra.mxu0 %v5763_v9  ;;  %4575 = vmatpush3.bf16.msra.mxu1 %v4951_v56  ;;  %v6006_v56 = vld [vmem:[#allocation14 + $0x48] ss:$12 sps:$4 sm:$0xff]  }
 0x55a   : > { %1978 = vmatprep.subr.bf16.mxu0 %v5769_v15  ;;  %4576 = vmatprep.subr.bf16.mxu1 %v6389_v42 }
 0x55d   : > { %1979 = vmatpush1.bf16.msra.mxu0 %v5771_v17  ;;  %4577 = vmatpush3.bf16.msra.mxu1 %v4952_v58  ;;  %v6009_v58 = vld [vmem:[#allocation14 + $0x64] ss:$12 sps:$4 sm:$0xff]  }
 0x55e   : > { %1980 = vmatprep.subr.bf16.mxu0 %v5775_v19  ;;  %4578 = vmatprep.subr.bf16.mxu1 %v6389_v42 }
 0x561   : > { %1981 = vmatpush1.bf16.msra.mxu0 %v5777_v22  ;;  %4579 = vmatpush3.bf16.msra.mxu1 %v4953_v59  ;;  %v6012_v59 = vld [vmem:[#allocation14 + $0x60] ss:$12 sps:$4 sm:$0xff]  }
 0x562   : > { %4584 = vmatprep.subr.bf16.mxu1 %v6389_v42  ;;  %2182 = vmatprep.subr.bf16.mxu0 %v5906_v61 }
 0x617   : > { %v5910_v62 = vpop.f32.mrb[12].mxu0  ;;  %v1780_v5 = vpop.f32.mrb[16].mxu1 }
 0x618   : > { %v1789_v6 = vadd.f32 %v1780_v5, %v5847_v7  ;;  %v5914_v9 = vpop.f32.mrb[13].mxu0  ;;  %v4562_v15 = vpop.f32.mrb[17].mxu1  ;;  %v5922_v7 = vld [vmem:[#allocation11] ss:$8 sps:$4 sm:$0xff]  }
 0x619   : > { %v5916_v17 = vpop.f32.mrb[14].mxu0  ;;  %v1783_v19 = vpop.f32.mrb[18].mxu1  ;;  %v6015_v5 = vld [vmem:[#allocation14 + $0x7c] ss:$12 sps:$4 sm:$0xff]  }
 0x61a   : > { %v1793_v22 = vadd.f32 %v1791_v8, %v1789_v6  ;;  %v1790_v24 = vadd.f32 %v1783_v19, %v5852_v20  ;;  %v5920_v18 = vpop.f32.mrb[15].mxu0  ;;  %v4563_v25 = vpop.f32.mrb[19].mxu1  ;;  %v5933_v20 = vld [vmem:[#allocation11 + $0x10] ss:$8 sps:$4 sm:$0xff]   ;;  %v2052_v19 = vmul.f32 0.9, %v5839_v41 }
 0x61b   : > { %v6018_v6 = vld [vmem:[#allocation14 + $0x78] ss:$12 sps:$4 sm:$0xff]  }
 0x61c   : > { %v4073_v46 = vadd.f32 -1.0, %v1793_v22  ;;  %v1794_v21 = vadd.f32 %v1792_v12, %v1790_v24  ;;  %vm1795_vm3 = vcmp.gt.f32.partialorder %v1793_v22, 1.0 }
 0x61e   : > { %v4074_v4 = vadd.f32 -1.0, %v1794_v21  ;;  %vm1796_vm4 = vcmp.gt.f32.partialorder %v1794_v21, 1.0  ;;  %v5926_v28 = vsel %vm1795_vm3, %v4073_v46, %v1793_v22  ;;  %v2053_v46 = vmul.f32 0.9, %v5843_v48 }
 0x61f   : > { %vm4101_vm5 = vmpackc.low %vm1796_vm4, %vm1795_vm3 }
 0x620   : > { %4102 = vmatmul.mubr.msk.bf16.vlgmr.msra.gmra.mrb[16].mxu0 %vm4101_vm5, %v6358_v1  ;;  %4581 = vmatmul.mubr.msk.bf16.vlgmr.msra.gmra.mrb[20].mxu1 %vm4101_vm5, %v6358_v1  ;;  %v5930_v54 = vsel %vm1796_vm4, %v4074_v4, %v1794_v21 }
 0x621   : > { %2183 = vmatpush1.bf16.msra.mxu0 %v5922_v7  ;;  %2214 = vmatprep.mubr.bf16.mxu0 %v6356_v3 }
 0x622   : > { %2184 = vmatprep.subr.bf16.mxu0 %v5924_v23  ;;  %4600 = vmatprep.mubr.msk.bf16.mxu1 %vm5339_vm0, %v6389_v42 }
 0x623   : > { %4585 = vmatpush3.bf16.msra.mxu1 %v4979_v11 }
 0x624   : > { %4586 = vmatprep.subr.bf16.mxu1 %v6389_v42 }
 0x625   : > { %2185 = vmatpush1.bf16.msra.mxu0 %v5933_v20 }
 0x626   : > { %2186 = vmatprep.subr.bf16.mxu0 %v5937_v29 }
 0x627   : > { %4587 = vmatpush3.bf16.msra.mxu1 %v4980_v13 }
 0x628   : > { %4588 = vmatprep.subr.bf16.mxu1 %v6389_v42 }
 0x629   : > { %2187 = vmatpush1.bf16.msra.mxu0 %v5942_v30 }
 0x62a   : > { %2188 = vmatprep.subr.bf16.mxu0 %v5945_v44 }
 0x62b   : > { %4589 = vmatpush3.bf16.msra.mxu1 %v4981_v14 }
 0x62c   : > { %4590 = vmatprep.subr.bf16.mxu1 %v6389_v42 }
 0x62d   : > { %2189 = vmatpush1.bf16.msra.mxu0 %v5948_v31 }
 0x62e   : > { %2190 = vmatprep.subr.bf16.mxu0 %v5951_v63 }
 0x62f   : > { %4591 = vmatpush3.bf16.msra.mxu1 %v4982_v16 }
 0x630   : > { %4592 = vmatprep.subr.bf16.mxu1 %v6389_v42 }
 0x631   : > { %2191 = vmatpush1.bf16.msra.mxu0 %v5954_v2 }
 0x632   : > { %2192 = vmatprep.subr.bf16.mxu0 %v5957_v33 }
 0x633   : > { %4593 = vmatpush3.bf16.msra.mxu1 %v4983_v26 }
 0x634   : > { %4594 = vmatprep.subr.bf16.mxu1 %v6389_v42 }
 0x635   : > { %2193 = vmatpush1.bf16.msra.mxu0 %v5960_v35 }
 0x636   : > { %2194 = vmatprep.subr.bf16.mxu0 %v5963_v36 }
 0x637   : > { %4595 = vmatpush3.bf16.msra.mxu1 %v4984_v27 }
 0x638   : > { %4596 = vmatprep.subr.bf16.mxu1 %v6389_v42 }
 0x639   : > { %2195 = vmatpush1.bf16.msra.mxu0 %v5966_v37 }
 0x63a   : > { %2196 = vmatprep.subr.bf16.mxu0 %v5969_v38 }
 0x63b   : > { %4597 = vmatpush3.bf16.msra.mxu1 %v4985_v40 }
 0x63c   : > { %4598 = vmatprep.subr.bf16.mxu1 %v6389_v42 }
 0x63d   : > { %2197 = vmatpush1.bf16.msra.mxu0 %v5972_v39 }
 0x63e   : > { %2528 = vmatprep.subr.bf16.mxu0 %v5988_v50 }
 0x63f   : > { %4599 = vmatpush3.bf16.msra.mxu1 %v4986_v43 }
 0x640   : > { %2215 = vmatmul.mubr.bf16.vlgmr.msra.gmra.mrb[16].mxu0 %v4978_v10  ;;  %4604 = vmatprep.subr.bf16.mxu1 %v6389_v42 }
 0x641   : > { %2560 = vmatprep.mubr.bf16.mxu0 %v6356_v3  ;;  %2529 = vmatpush1.bf16.msra.mxu0 %v5986_v45 }
 0x642   : > { %2530 = vmatprep.subr.bf16.mxu0 %v5990_v57 }
 0x645   : > { %2531 = vmatpush1.bf16.msra.mxu0 %v5994_v55 }
 0x646   : > { %2532 = vmatprep.subr.bf16.mxu0 %v5997_v51 }
 0x649   : > { %2533 = vmatpush1.bf16.msra.mxu0 %v6000_v49 }
 0x64a   : > { %2534 = vmatprep.subr.bf16.mxu0 %v6003_v52 }
 0x64d   : > { %2535 = vmatpush1.bf16.msra.mxu0 %v6006_v56 }
 0x64e   : > { %2536 = vmatprep.subr.bf16.mxu0 %v6009_v58 }
 0x651   : > { %2537 = vmatpush1.bf16.msra.mxu0 %v6012_v59 }
 0x652   : > { %2538 = vmatprep.subr.bf16.mxu0 %v6015_v5 }
 0x655   : > { %2539 = vmatpush1.bf16.msra.mxu0 %v6018_v6 }
 0x6f3   : > { %v2043_v8 = vpop.f32.mrb[20].mxu1 }
 0x6f4   : > { %v2050_v15 = vadd.f32 %v5835_v34, %v2043_v8  ;;  %v4582_v22 = vpop.f32.mrb[21].mxu1 }
 0x6f5   : > { %v2046_v24 = vpop.f32.mrb[22].mxu1 }
 0x6f6   : > { %v2054_v12 = vadd.f32 %v2052_v19, %v2050_v15  ;;  %v2051_v25 = vadd.f32 %v5835_v34, %v2046_v24  ;;  %v4583_v21 = vpop.f32.mrb[23].mxu1  ;;  %v2231_v15 = vmul.f32 0.9, %v5856_v32 }
 0x6f8   : > { %v4105_v4 = vadd.f32 -1.0, %v2054_v12  ;;  %v2055_v10 = vadd.f32 %v2053_v46, %v2051_v25  ;;  %vm2056_vm6 = vcmp.gt.f32.partialorder %v2054_v12, 1.0  ;;  %v2232_v25 = vmul.f32 0.9, %v5859_v0  ;;  %v5002_v0 = vld [vmem:[#allocation14 + $0x50] ss:$12 sps:$4 sm:$0xff]  }
 0x6f9   : > { %v4107_v14 = vsel %vm2056_vm6, 1.0, %v6389_v42 }
 0x6fa   : > { %v4106_v11 = vadd.f32 -1.0, %v2055_v10  ;;  %v6026_v13 = vsel %vm2056_vm6, %v4105_v4, %v2054_v12  ;;  %vm2057_vm7 = vcmp.gt.f32.partialorder %v2055_v10, 1.0 }
 0x6fb   : > { %v4108_v41 = vsel %vm2057_vm7, 1.0, %v6389_v42 }
 0x6fc   : > { %v6030_v16 = vsel %vm2057_vm7, %v4106_v11, %v2055_v10  ;;  %v4345_v26 = vpack.c.bf16 %v4108_v41, %v4107_v14  ;;  %v5006_v11 = vld [vmem:[#allocation14 + $0x68] ss:$12 sps:$4 sm:$0xff]   ;;  %v5010_v14 = vld [vmem:[#allocation14 + $0x80] ss:$12 sps:$4 sm:$0xff]  }
 0x6fd   : > { %v6056_v41 = vld [vmem:[#allocation14 + $0x94] ss:$12 sps:$4 sm:$0xff]  }
 0x6fe   : > { %4353 = vst [vmem:[%s5618_s13 + $0x8] sm:$0xff] %v4345_v26   ;;  %v6058_v26 = vld [vmem:[#allocation14 + $0x90] ss:$12 sps:$4 sm:$0xff]   ;;  %2540 = vmatprep.subr.bf16.mxu0 %v6056_v41 }
 0x6ff   : > { %2541 = vmatpush1.bf16.msra.mxu0 %v6058_v26 }
 0x713   : > { %v2216_v27 = vpop.f32.mrb[16].mxu0 }
 0x714   : > { %v2227_v40 = vadd.f32 %v2216_v27, %v5910_v62  ;;  %v6034_v48 = vpop.f32.mrb[17].mxu0  ;;  %v4990_v62 = vld [vmem:[#allocation14 + $0x8] ss:$12 sps:$4 sm:$0xff]   ;;  %v5014_v27 = vld [vmem:[#allocation14 + $0x98] ss:$12 sps:$4 sm:$0xff]  }
 0x715   : > { %v2220_v43 = vpop.f32.mrb[18].mxu0 }
 0x716   : > { %v2229_v8 = vadd.f32 %v5685_v47, %v2227_v40  ;;  %v2228_v19 = vadd.f32 %v2220_v43, %v5916_v17  ;;  %v6039_v22 = vpop.f32.mrb[19].mxu0  ;;  %v4994_v17 = vld [vmem:[#allocation14 + $0x20] ss:$12 sps:$4 sm:$0xff]   ;;  %v6065_v43 = vld [vmem:[#allocation14 + $0xa8] ss:$12 sps:$4 sm:$0xff]  }
 0x717   : > { %v6062_v40 = vld [vmem:[#allocation14 + $0xac] ss:$12 sps:$4 sm:$0xff]  }
 0x718   : > { %v2233_v24 = vadd.f32 %v2231_v15, %v2229_v8  ;;  %v2230_v12 = vadd.f32 %v5685_v47, %v2228_v19  ;;  %v4998_v47 = vld [vmem:[#allocation14 + $0x38] ss:$12 sps:$4 sm:$0xff]   ;;  %v5018_v8 = vld [vmem:[#allocation14 + $0xb0] ss:$12 sps:$4 sm:$0xff]   ;;  %2542 = vmatprep.subr.bf16.mxu0 %v6062_v40 }
 0x719   : > { %2543 = vmatpush1.bf16.msra.mxu0 %v6065_v43  ;;  %v6070_v15 = vld [vmem:[#allocation13 + $0x4] ss:$12 sps:$4 sm:$0xff]  }
 0x71a   : > { %v4132_v46 = vadd.f32 -1.0, %v2233_v24  ;;  %v2234_v21 = vadd.f32 %v2232_v25, %v2230_v12  ;;  %vm2235_vm8 = vcmp.gt.f32.partialorder %v2233_v24, 1.0  ;;  %2791 = vmatprep.subr.bf16.mxu0 %v6070_v15  ;;  %v2353_v12 = vmul.f32 0.9, %v5875_v60 }
 0x71c   : > { %v4133_v4 = vadd.f32 -1.0, %v2234_v21  ;;  %vm2236_vm9 = vcmp.gt.f32.partialorder %v2234_v21, 1.0  ;;  %v6043_v10 = vsel %vm2235_vm8, %v4132_v46, %v2233_v24 }
 0x71d   : > { %vm4144_vm10 = vmpackc.low %vm2236_vm9, %vm2235_vm8 }
 0x71e   : > { %4601 = vmatmul.mubr.msk.bf16.vlgmr.msra.gmra.mrb[24].mxu1 %vm4144_vm10, %v6358_v1  ;;  %v6046_v32 = vsel %vm2236_vm9, %v4133_v4, %v2234_v21  ;;  %v2354_v4 = vmul.f32 0.9, %v5879_v53  ;;  %v6088_v53 = vld [vmem:[#allocation13 + $0x18] ss:$12 sps:$4 sm:$0xff]  }
 0x71f   : > { %4605 = vmatpush3.bf16.msra.mxu1 %v4990_v62  ;;  %4620 = vmatprep.mubr.msk.bf16.mxu1 %vm5339_vm0, %v6389_v42 }
 0x720   : > { %4606 = vmatprep.subr.bf16.mxu1 %v6389_v42 }
 0x723   : > { %4607 = vmatpush3.bf16.msra.mxu1 %v4994_v17 }
 0x724   : > { %4608 = vmatprep.subr.bf16.mxu1 %v6389_v42 }
 0x727   : > { %4609 = vmatpush3.bf16.msra.mxu1 %v4998_v47 }
 0x728   : > { %4610 = vmatprep.subr.bf16.mxu1 %v6389_v42 }
 0x72b   : > { %4611 = vmatpush3.bf16.msra.mxu1 %v5002_v0 }
 0x72c   : > { %4612 = vmatprep.subr.bf16.mxu1 %v6389_v42 }
 0x72f   : > { %4613 = vmatpush3.bf16.msra.mxu1 %v5006_v11  ;;  %v6077_v11 = vld [vmem:[#allocation13] ss:$12 sps:$4 sm:$0xff]  }
 0x730   : > { %4614 = vmatprep.subr.bf16.mxu1 %v6389_v42 }
 0x733   : > { %4615 = vmatpush3.bf16.msra.mxu1 %v5010_v14  ;;  %v5022_v14 = vld [vmem:[#allocation13 + $0x8] ss:$12 sps:$4 sm:$0xff]  }
 0x734   : > { %4616 = vmatprep.subr.bf16.mxu1 %v6389_v42 }
 0x737   : > { %4617 = vmatpush3.bf16.msra.mxu1 %v5014_v27 }
 0x738   : > { %4618 = vmatprep.subr.bf16.mxu1 %v6389_v42 }
 0x73b   : > { %4619 = vmatpush3.bf16.msra.mxu1 %v5018_v8  ;;  %v6079_v8 = vld [vmem:[#allocation13 + $0x1c] ss:$12 sps:$4 sm:$0xff]  }
 0x73c   : > { %4624 = vmatprep.subr.bf16.mxu1 %v6389_v42 }
 0x7f1   : > { %v2344_v19 = vpop.f32.mrb[24].mxu1 }
 0x7f2   : > { %v2351_v24 = vadd.f32 %v2344_v19, %v5914_v9  ;;  %v4602_v25 = vpop.f32.mrb[25].mxu1  ;;  %v6092_v19 = vld [vmem:[#allocation13 + $0x34] ss:$12 sps:$4 sm:$0xff]  }
 0x7f3   : > { %v2347_v46 = vpop.f32.mrb[26].mxu1  ;;  %v6102_v25 = vld [vmem:[#allocation13 + $0x4c] ss:$12 sps:$4 sm:$0xff]  }
 0x7f4   : > { %v2355_v21 = vadd.f32 %v2353_v12, %v2351_v24  ;;  %v2352_v62 = vadd.f32 %v2347_v46, %v5920_v18  ;;  %v4603_v17 = vpop.f32.mrb[27].mxu1  ;;  %v5026_v18 = vld [vmem:[#allocation13 + $0x20] ss:$12 sps:$4 sm:$0xff]   ;;  %v6098_v24 = vld [vmem:[#allocation13 + $0x30] ss:$12 sps:$4 sm:$0xff]   ;;  %6391 = vst [vmem:[#allocation24_spill] sm:$0xff] %v6102_v25 }
 0x7f5   : > { %v5030_v12 = vld [vmem:[#allocation13 + $0x38] ss:$12 sps:$4 sm:$0xff]   ;;  %v6105_v46 = vld [vmem:[#allocation13 + $0x48] ss:$12 sps:$4 sm:$0xff]  }
 0x7f6   : > { %v4146_v47 = vadd.f32 -1.0, %v2355_v21  ;;  %v2356_v0 = vadd.f32 %v2354_v4, %v2352_v62  ;;  %vm2357_vm11 = vcmp.gt.f32.partialorder %v2355_v21, 1.0  ;;  %6392 = vst [vmem:[#allocation25_spill] sm:$0xff] %v6105_v46  ;;  %v6109_v62 = vld [vmem:[#allocation13 + $0x64] ss:$12 sps:$4 sm:$0xff]  }
 0x7f7   : > { %6393 = vst [vmem:[#allocation26_spill] sm:$0xff] %v6109_v62  ;;  %v6112_v4 = vld [vmem:[#allocation13 + $0x60] ss:$12 sps:$4 sm:$0xff]   ;;  %v5038_v17 = vld [vmem:[#allocation13 + $0x68] ss:$12 sps:$4 sm:$0xff]  }
 0x7f8   : > { %v4147_v27 = vadd.f32 -1.0, %v2356_v0  ;;  %vm2358_vm12 = vcmp.gt.f32.partialorder %v2356_v0, 1.0  ;;  %v6081_v9 = vsel %vm2357_vm11, %v4146_v47, %v2355_v21  ;;  %v5034_v21 = vld [vmem:[#allocation13 + $0x50] ss:$12 sps:$4 sm:$0xff]   ;;  %6394 = vst [vmem:[#allocation27_spill] sm:$0xff] %v6112_v4 }
 0x7f9   : > { %vm4174_vm13 = vmpackc.low %vm2358_vm12, %vm2357_vm11  ;;  %v6116_v47 = vld [vmem:[#allocation13 + $0x7c] ss:$12 sps:$4 sm:$0xff]  }
 0x7fa   : > { %4175 = vmatmul.mubr.msk.bf16.vlgmr.msra.gmra.mrb[20].mxu0 %vm4174_vm13, %v6358_v1  ;;  %4621 = vmatmul.mubr.msk.bf16.vlgmr.msra.gmra.mrb[28].mxu1 %vm4174_vm13, %v6358_v1  ;;  %v6085_v60 = vsel %vm2358_vm12, %v4147_v27, %v2356_v0  ;;  %6395 = vst [vmem:[#allocation28_spill] sm:$0xff] %v6116_v47  ;;  %v6119_v0 = vld [vmem:[#allocation13 + $0x78] ss:$12 sps:$4 sm:$0xff]   ;;  %v6125_v27 = vld [vmem:[#allocation13 + $0x94] ss:$12 sps:$4 sm:$0xff]  }
 0x7fb   : > { %2792 = vmatpush1.bf16.msra.mxu0 %v6077_v11  ;;  %4625 = vmatpush3.bf16.msra.mxu1 %v5022_v14  ;;  %6396 = vst [vmem:[#allocation29_spill] sm:$0xff] %v6119_v0  ;;  %v5042_v14 = vld [vmem:[#allocation13 + $0x80] ss:$12 sps:$4 sm:$0xff]   ;;  %6397 = vst [vmem:[#allocation30_spill] sm:$0xff] %v6125_v27 }
 0x7fc   : > { %2793 = vmatprep.subr.bf16.mxu0 %v6079_v8  ;;  %4626 = vmatprep.subr.bf16.mxu1 %v6389_v42 }
 0x7fd   : > { %2823 = vmatprep.mubr.bf16.mxu0 %v6356_v3  ;;  %4640 = vmatprep.mubr.msk.bf16.mxu1 %vm5339_vm0, %v6389_v42 }
 0x7ff   : > { %2794 = vmatpush1.bf16.msra.mxu0 %v6088_v53  ;;  %4627 = vmatpush3.bf16.msra.mxu1 %v5026_v18  ;;  %v6127_v18 = vld [vmem:[#allocation13 + $0x90] ss:$12 sps:$4 sm:$0xff]  }
 0x800   : > { %2795 = vmatprep.subr.bf16.mxu0 %v6092_v19  ;;  %4628 = vmatprep.subr.bf16.mxu1 %v6389_v42  ;;  %6398 = vst [vmem:[#allocation31_spill] sm:$0xff] %v6127_v18 }
 0x803   : > { %2796 = vmatpush1.bf16.msra.mxu0 %v6098_v24  ;;  %4629 = vmatpush3.bf16.msra.mxu1 %v5030_v12  ;;  %v5046_v12 = vld [vmem:[#allocation13 + $0x98] ss:$12 sps:$4 sm:$0xff]  }
 0x804   : > { %2797 = vmatprep.subr.bf16.mxu0 %v6102_v25  ;;  %4630 = vmatprep.subr.bf16.mxu1 %v6389_v42 }
 0x807   : > { %2798 = vmatpush1.bf16.msra.mxu0 %v6105_v46  ;;  %4631 = vmatpush3.bf16.msra.mxu1 %v5034_v21  ;;  %v6131_v21 = vld [vmem:[#allocation13 + $0xac] ss:$12 sps:$4 sm:$0xff]  }
 0x808   : > { %2799 = vmatprep.subr.bf16.mxu0 %v6109_v62  ;;  %4632 = vmatprep.subr.bf16.mxu1 %v6389_v42  ;;  %6399 = vst [vmem:[#allocation32_spill] sm:$0xff] %v6131_v21 }
 0x80b   : > { %2800 = vmatpush1.bf16.msra.mxu0 %v6112_v4  ;;  %4633 = vmatpush3.bf16.msra.mxu1 %v5038_v17  ;;  %v6133_v17 = vld [vmem:[#allocation13 + $0xa8] ss:$12 sps:$4 sm:$0xff]  }
 0x80c   : > { %2801 = vmatprep.subr.bf16.mxu0 %v6116_v47  ;;  %4634 = vmatprep.subr.bf16.mxu1 %v6389_v42  ;;  %6400 = vst [vmem:[#allocation33_spill] sm:$0xff] %v6133_v17 }
 0x80f   : > { %2802 = vmatpush1.bf16.msra.mxu0 %v6119_v0  ;;  %4635 = vmatpush3.bf16.msra.mxu1 %v5042_v14  ;;  %v5050_v14 = vld [vmem:[#allocation13 + $0xb0] ss:$12 sps:$4 sm:$0xff]  }
 0x810   : > { %4636 = vmatprep.subr.bf16.mxu1 %v6389_v42  ;;  %2803 = vmatprep.subr.bf16.mxu0 %v6125_v27 }
 0x813   : > { %2804 = vmatpush1.bf16.msra.mxu0 %v6127_v18  ;;  %4637 = vmatpush3.bf16.msra.mxu1 %v5046_v12  ;;  %v2616_v18 = vmul.f32 0.9, %v5926_v28 }
 0x814   : > { %4638 = vmatprep.subr.bf16.mxu1 %v6389_v42  ;;  %2805 = vmatprep.subr.bf16.mxu0 %v6131_v21 }
 0x817   : > { %2806 = vmatpush1.bf16.msra.mxu0 %v6133_v17  ;;  %4639 = vmatpush3.bf16.msra.mxu1 %v5050_v14 }
 0x818   : > { %3007 = vmatprep.subr.bf16.mxu0 %v5906_v61  ;;  %4644 = vmatprep.subr.bf16.mxu1 %v6389_v42  ;;  %v2617_v61 = vmul.f32 0.9, %v5930_v54  ;;  %v6402_v54 = vmov 0  }
 0x8cd   : > { %v6140_v3 = vpop.f32.mrb[20].mxu0  ;;  %v2605_v1 = vpop.f32.mrb[28].mxu1 }
 0x8ce   : > { %v2614_v12 = vadd.f32 %v2605_v1, %v6034_v48  ;;  %v6144_v27 = vpop.f32.mrb[21].mxu0  ;;  %v4622_v0 = vpop.f32.mrb[29].mxu1  ;;  %v6401_v48 = vmov 1.0|1.0  }
 0x8cf   : > { %v6146_v47 = vpop.f32.mrb[22].mxu0  ;;  %v2608_v21 = vpop.f32.mrb[30].mxu1 }
 0x8d0   : > { %v2618_v4 = vadd.f32 %v2616_v18, %v2614_v12  ;;  %v2615_v14 = vadd.f32 %v2608_v21, %v6039_v22  ;;  %v6150_v17 = vpop.f32.mrb[23].mxu0  ;;  %v4623_v62 = vpop.f32.mrb[31].mxu1  ;;  %v5089_v22 = vld [vmem:[%s6388_s7] ss:$0 sm:$0xff] }
 0x8d2   : > { %v4178_v46 = vadd.f32 -1.0, %v2618_v4  ;;  %v2619_v25 = vadd.f32 %v2617_v61, %v2615_v14  ;;  %vm2620_vm14 = vcmp.gt.f32.partialorder %v2618_v4, 1.0  ;;  %v5064_v14 = vld [vmem:[#allocation14 + $0x68] ss:$12 sps:$4 sm:$0xff]   ;;  %v5065_v61 = vld [vmem:[#allocation14 + $0x80] ss:$12 sps:$4 sm:$0xff]  }
 0x8d4   : > { %v4179_v1 = vadd.f32 -1.0, %v2619_v25  ;;  %vm2621_vm15 = vcmp.gt.f32.partialorder %v2619_v25, 1.0  ;;  %v6152_v28 = vsel %vm2620_vm14, %v4178_v46, %v2618_v4  ;;  %v3057_v46 = vmul.f32 0.9, %v6046_v32  ;;  %v5060_v4 = vld [vmem:[#allocation14 + $0x8] ss:$12 sps:$4 sm:$0xff]  }
 0x8d5   : > { %vm4206_vm1 = vmpackc.low %vm2621_vm15, %vm2620_vm14  ;;  %v5062_v32 = vld [vmem:[#allocation14 + $0x38] ss:$12 sps:$4 sm:$0xff]  }
 0x8d6   : > { %4207 = vmatmul.mubr.msk.bf16.vlgmr.msra.gmra.mrb[24].mxu0 %vm4206_vm1, %v6401_v48  ;;  %4641 = vmatmul.mubr.msk.bf16.vlgmr.msra.gmra.mrb[32].mxu1 %vm4206_vm1, %v6401_v48  ;;  %v6156_v0 = vsel %vm2621_vm15, %v4179_v1, %v2619_v25  ;;  %v5066_v1 = vld [vmem:[#allocation14 + $0x98] ss:$12 sps:$4 sm:$0xff]  }
 0x8d7   : > { %3008 = vmatpush1.bf16.msra.mxu0 %v5922_v7  ;;  %3039 = vmatprep.mubr.bf16.mxu0 %v6402_v54  ;;  %v5051_v7 = vld [vmem:[%s5604_s19 + $0x18] sm:$0xff]   ;;  %s6285_s19 = scalar_lea.hbm %s6413_s6, %s4340_s21 }
 0x8d8   : > { %3009 = vmatprep.subr.bf16.mxu0 %v5924_v23  ;;  %4660 = vmatprep.mubr.msk.bf16.mxu1 %vm5339_vm0, %v6389_v42  ;;  %v5052_v23 = vld [vmem:[#allocation16] sm:$0xff]  }
 0x8d9   : > { %4645 = vmatpush3.bf16.msra.mxu1 %v5052_v23 }
 0x8da   : > { %4646 = vmatprep.subr.bf16.mxu1 %v6389_v42 }
 0x8db   : > { %3010 = vmatpush1.bf16.msra.mxu0 %v5933_v20  ;;  %v5053_v20 = vld [vmem:[#allocation16 + $0x8] sm:$0xff]  }
 0x8dc   : > { %3011 = vmatprep.subr.bf16.mxu0 %v5937_v29  ;;  %v5054_v29 = vld [vmem:[#allocation16 + $0x10] sm:$0xff]  }
 0x8dd   : > { %4647 = vmatpush3.bf16.msra.mxu1 %v5053_v20 }
 0x8de   : > { %4648 = vmatprep.subr.bf16.mxu1 %v6389_v42 }
 0x8df   : > { %3012 = vmatpush1.bf16.msra.mxu0 %v5942_v30  ;;  %v5055_v30 = vld [vmem:[#allocation16 + $0x18] sm:$0xff]  }
 0x8e0   : > { %3013 = vmatprep.subr.bf16.mxu0 %v5945_v44  ;;  %v5056_v44 = vld [vmem:[#allocation16 + $0x20] sm:$0xff]  }
 0x8e1   : > { %4649 = vmatpush3.bf16.msra.mxu1 %v5054_v29  ;;  %v3178_v29 = vmul.f32 0.9, %v6081_v9  ;;  %v5069_v9 = vld [vmem:[#allocation13 + $0x20] ss:$12 sps:$4 sm:$0xff]  }
 0x8e2   : > { %4650 = vmatprep.subr.bf16.mxu1 %v6389_v42 }
 0x8e3   : > { %3014 = vmatpush1.bf16.msra.mxu0 %v5948_v31  ;;  %v5057_v31 = vld [vmem:[#allocation16 + $0x28] sm:$0xff]  }
 0x8e4   : > { %3015 = vmatprep.subr.bf16.mxu0 %v5951_v63  ;;  %v5058_v63 = vld [vmem:[#allocation16 + $0x30] sm:$0xff]  }
 0x8e5   : > { %4651 = vmatpush3.bf16.msra.mxu1 %v5055_v30 }
 0x8e6   : > { %4652 = vmatprep.subr.bf16.mxu1 %v6389_v42 }
 0x8e7   : > { %3016 = vmatpush1.bf16.msra.mxu0 %v5954_v2  ;;  %v5059_v2 = vld [vmem:[#allocation16 + $0x38] sm:$0xff]  }
 0x8e8   : > { %3017 = vmatprep.subr.bf16.mxu0 %v5957_v33 }
 0x8e9   : > { %4653 = vmatpush3.bf16.msra.mxu1 %v5056_v44 }
 0x8ea   : > { %4654 = vmatprep.subr.bf16.mxu1 %v6389_v42 }
 0x8eb   : > { %3018 = vmatpush1.bf16.msra.mxu0 %v5960_v35 }
 0x8ec   : > { %3019 = vmatprep.subr.bf16.mxu0 %v5963_v36  ;;  %v2877_v36 = vmul.f32 0.9, %v6026_v13 }
 0x8ed   : > { %4655 = vmatpush3.bf16.msra.mxu1 %v5057_v31 }
 0x8ee   : > { %4656 = vmatprep.subr.bf16.mxu1 %v6389_v42 }
 0x8ef   : > { %3020 = vmatpush1.bf16.msra.mxu0 %v5966_v37 }
 0x8f0   : > { %3021 = vmatprep.subr.bf16.mxu0 %v5969_v38 }
 0x8f1   : > { %4657 = vmatpush3.bf16.msra.mxu1 %v5058_v63 }
 0x8f2   : > { %4658 = vmatprep.subr.bf16.mxu1 %v6389_v42 }
 0x8f3   : > { %3022 = vmatpush1.bf16.msra.mxu0 %v5972_v39 }
 0x8f4   : > { %3353 = vmatprep.subr.bf16.mxu0 %v5988_v50  ;;  %v2878_v50 = vmul.f32 0.9, %v6030_v16 }
 0x8f5   : > { %4659 = vmatpush3.bf16.msra.mxu1 %v5059_v2  ;;  %v3179_v2 = vmul.f32 0.9, %v6085_v60  ;;  %v5070_v60 = vld [vmem:[#allocation13 + $0x38] ss:$12 sps:$4 sm:$0xff]  }
 0x8f6   : > { %3040 = vmatmul.mubr.bf16.vlgmr.msra.gmra.mrb[24].mxu0 %v5051_v7  ;;  %4664 = vmatprep.subr.bf16.mxu1 %v6389_v42  ;;  %v5067_v7 = vld [vmem:[#allocation14 + $0xb0] ss:$12 sps:$4 sm:$0xff]  }
 0x8f7   : > { %3354 = vmatpush1.bf16.msra.mxu0 %v5986_v45  ;;  %3385 = vmatprep.mubr.bf16.mxu0 %v6402_v54 }
 0x8f8   : > { %3355 = vmatprep.subr.bf16.mxu0 %v5990_v57 }
 0x8fb   : > { %3356 = vmatpush1.bf16.msra.mxu0 %v5994_v55 }
 0x8fc   : > { %3357 = vmatprep.subr.bf16.mxu0 %v5997_v51 }
 0x8ff   : > { %3358 = vmatpush1.bf16.msra.mxu0 %v6000_v49 }
 0x900   : > { %3359 = vmatprep.subr.bf16.mxu0 %v6003_v52 }
 0x903   : > { %3360 = vmatpush1.bf16.msra.mxu0 %v6006_v56 }
 0x904   : > { %3361 = vmatprep.subr.bf16.mxu0 %v6009_v58 }
 0x907   : > { %3362 = vmatpush1.bf16.msra.mxu0 %v6012_v59 }
 0x908   : > { %3363 = vmatprep.subr.bf16.mxu0 %v6015_v5 }
 0x90b   : > { %3364 = vmatpush1.bf16.msra.mxu0 %v6018_v6 }
 0x90c   : > { %3365 = vmatprep.subr.bf16.mxu0 %v6056_v41 }
 0x90f   : > { %3366 = vmatpush1.bf16.msra.mxu0 %v6058_v26  ;;  %v3056_v26 = vmul.f32 0.9, %v6043_v10  ;;  %v5061_v10 = vld [vmem:[#allocation14 + $0x20] ss:$12 sps:$4 sm:$0xff]  }
 0x910   : > { %3367 = vmatprep.subr.bf16.mxu0 %v6062_v40 }
 0x913   : > { %3368 = vmatpush1.bf16.msra.mxu0 %v6065_v43 }
 0x914   : > { %3616 = vmatprep.subr.bf16.mxu0 %v6070_v15 }
 0x9a9   : > { %v2868_v33 = vpop.f32.mrb[32].mxu1 }
 0x9aa   : > { %v2875_v35 = vadd.f32 %v5835_v34, %v2868_v33  ;;  %v4642_v37 = vpop.f32.mrb[33].mxu1 }
 0x9ab   : > { %v2871_v38 = vpop.f32.mrb[34].mxu1  ;;  %v5068_v37 = vld [vmem:[#allocation13 + $0x8] ss:$12 sps:$4 sm:$0xff]  }
 0x9ac   : > { %v2879_v39 = vadd.f32 %v2877_v36, %v2875_v35  ;;  %v2876_v45 = vadd.f32 %v5835_v34, %v2871_v38  ;;  %v4643_v57 = vpop.f32.mrb[35].mxu1 }
 0x9ad   : > { %v6409_v57 = vld [vmem:[#allocation30_spill] sm:$0xff] }
 0x9ae   : > { %v4210_v55 = vadd.f32 -1.0, %v2879_v39  ;;  %v2880_v51 = vadd.f32 %v2878_v50, %v2876_v45  ;;  %vm2881_vm2 = vcmp.gt.f32.partialorder %v2879_v39, 1.0  ;;  %v6405_v45 = vld [vmem:[#allocation26_spill] sm:$0xff]  ;;  %v6407_v50 = vld [vmem:[#allocation28_spill] sm:$0xff] }
 0x9af   : > { %v4212_v56 = vsel %vm2881_vm2, 1.0, %v6389_v42 }
 0x9b0   : > { %v4211_v49 = vadd.f32 -1.0, %v2880_v51  ;;  %v6207_v52 = vsel %vm2881_vm2, %v4210_v55, %v2879_v39  ;;  %vm2882_vm3 = vcmp.gt.f32.partialorder %v2880_v51, 1.0  ;;  %v6410_v55 = vld [vmem:[#allocation31_spill] sm:$0xff] }
 0x9b1   : > { %v4213_v58 = vsel %vm2882_vm3, 1.0, %v6389_v42 }
 0x9b2   : > { %v6211_v59 = vsel %vm2882_vm3, %v4211_v49, %v2880_v51  ;;  %v4348_v5 = vpack.c.bf16 %v4213_v58, %v4212_v56  ;;  %v6411_v51 = vld [vmem:[#allocation32_spill] sm:$0xff]  ;;  %v6412_v49 = vld [vmem:[#allocation33_spill] sm:$0xff]  ;;  %v5075_v58 = vld [vmem:[#allocation13 + $0xb0] ss:$12 sps:$4 sm:$0xff]  }
 0x9b3   : > { %v5074_v56 = vld [vmem:[#allocation13 + $0x98] ss:$12 sps:$4 sm:$0xff]  }
 0x9b4   : > { %4354 = vst [vmem:[%s5618_s13 + $0x10] sm:$0xff] %v4348_v5  }
 0x9c9   : > { %v3041_v6 = vpop.f32.mrb[24].mxu0 }
 0x9ca   : > { %v3052_v34 = vadd.f32 %v3041_v6, %v6140_v3  ;;  %v6215_v13 = vpop.f32.mrb[25].mxu0 }
 0x9cb   : > { %v3045_v16 = vpop.f32.mrb[26].mxu0 }
 0x9cc   : > { %v3054_v41 = vadd.f32 %v5089_v22, %v3052_v34  ;;  %v3053_v40 = vadd.f32 %v3045_v16, %v6146_v47  ;;  %v6222_v43 = vpop.f32.mrb[27].mxu0  ;;  %v5063_v47 = vld [vmem:[#allocation14 + $0x50] ss:$12 sps:$4 sm:$0xff]   ;;  %v3441_v16 = vmul.f32 0.9, %v6152_v28 }
 0x9ce   : > { %v3058_v15 = vadd.f32 %v3056_v26, %v3054_v41  ;;  %v3055_v25 = vadd.f32 %v5089_v22, %v3053_v40 }
 0x9d0   : > { %v4237_v62 = vadd.f32 -1.0, %v3058_v15  ;;  %v3059_v3 = vadd.f32 %v3057_v46, %v3055_v25  ;;  %vm3060_vm4 = vcmp.gt.f32.partialorder %v3058_v15, 1.0  ;;  %v3442_v46 = vmul.f32 0.9, %v6156_v0  ;;  %v5090_v0 = vld [vmem:[%s6390_s14] ss:$0 sm:$0xff] }
 0x9d2   : > { %v4238_v18 = vadd.f32 -1.0, %v3059_v3  ;;  %vm3061_vm5 = vcmp.gt.f32.partialorder %v3059_v3, 1.0  ;;  %v3064_v21 = vsel %vm3060_vm4, %v4237_v62, %v3058_v15 }
 0x9d3   : > { %vm4249_vm6 = vmpackc.low %vm3061_vm5, %vm3060_vm4  ;;  %3735 = vst [vmem:[#allocation4] sm:$0xff] %v3064_v21 }
 0x9d4   : > { %v3065_v12 = vsel %vm3061_vm5, %v4238_v18, %v3059_v3  ;;  %4661 = vmatmul.mubr.msk.bf16.vlgmr.msra.gmra.mrb[36].mxu1 %vm4249_vm6, %v6401_v48 }
 0x9d5   : > { %3736 = vst [vmem:[#allocation4 + $0x8] sm:$0xff] %v3065_v12  ;;  %4665 = vmatpush3.bf16.msra.mxu1 %v5060_v4  ;;  %4680 = vmatprep.mubr.msk.bf16.mxu1 %vm5339_vm0, %v6389_v42 }
 0x9d6   : > { %4666 = vmatprep.subr.bf16.mxu1 %v6389_v42 }
 0x9d9   : > { %4667 = vmatpush3.bf16.msra.mxu1 %v5061_v10 }
 0x9da   : > { %4668 = vmatprep.subr.bf16.mxu1 %v6389_v42 }
 0x9dd   : > { %4669 = vmatpush3.bf16.msra.mxu1 %v5062_v32  ;;  %v3702_v32 = vmul.f32 0.9, %v6207_v52 }
 0x9de   : > { %4670 = vmatprep.subr.bf16.mxu1 %v6389_v42 }
 0x9e1   : > { %4671 = vmatpush3.bf16.msra.mxu1 %v5063_v47 }
 0x9e2   : > { %4672 = vmatprep.subr.bf16.mxu1 %v6389_v42 }
 0x9e5   : > { %4673 = vmatpush3.bf16.msra.mxu1 %v5064_v14 }
 0x9e6   : > { %4674 = vmatprep.subr.bf16.mxu1 %v6389_v42 }
 0x9e9   : > { %4675 = vmatpush3.bf16.msra.mxu1 %v5065_v61 }
 0x9ea   : > { %4676 = vmatprep.subr.bf16.mxu1 %v6389_v42 }
 0x9ed   : > { %4677 = vmatpush3.bf16.msra.mxu1 %v5066_v1 }
 0x9ee   : > { %4678 = vmatprep.subr.bf16.mxu1 %v6389_v42 }
 0x9f1   : > { %4679 = vmatpush3.bf16.msra.mxu1 %v5067_v7 }
 0x9f2   : > { %4684 = vmatprep.subr.bf16.mxu1 %v6389_v42 }
 0xaa7   : > { %v3169_v23 = vpop.f32.mrb[36].mxu1 }
 0xaa8   : > { %v3176_v20 = vadd.f32 %v3169_v23, %v6144_v27  ;;  %v4662_v30 = vpop.f32.mrb[37].mxu1  ;;  %v3703_v23 = vmul.f32 0.9, %v6211_v59 }
 0xaa9   : > { %v3172_v44 = vpop.f32.mrb[38].mxu1 }
 0xaaa   : > { %v3180_v31 = vadd.f32 %v3178_v29, %v3176_v20  ;;  %v3177_v63 = vadd.f32 %v3172_v44, %v6150_v17  ;;  %v4663_v33 = vpop.f32.mrb[39].mxu1  ;;  %v6404_v17 = vld [vmem:[#allocation25_spill] sm:$0xff] }
 0xaac   : > { %v4251_v35 = vadd.f32 -1.0, %v3180_v31  ;;  %v3181_v36 = vadd.f32 %v3179_v2, %v3177_v63  ;;  %vm3182_vm7 = vcmp.gt.f32.partialorder %v3180_v31, 1.0 }
 0xaae   : > { %v4252_v38 = vadd.f32 -1.0, %v3181_v36  ;;  %vm3183_vm8 = vcmp.gt.f32.partialorder %v3181_v36, 1.0  ;;  %v3186_v39 = vsel %vm3182_vm7, %v4251_v35, %v3180_v31 }
 0xaaf   : > { %vm4279_vm9 = vmpackc.low %vm3183_vm8, %vm3182_vm7  ;;  %3737 = vst [vmem:[#allocation5] sm:$0xff] %v3186_v39 }
 0xab0   : > { %v3187_v27 = vsel %vm3183_vm8, %v4252_v38, %v3181_v36  ;;  %4280 = vmatmul.mubr.msk.bf16.vlgmr.msra.gmra.mrb[28].mxu0 %vm4279_vm9, %v6401_v48  ;;  %4681 = vmatmul.mubr.msk.bf16.vlgmr.msra.gmra.mrb[40].mxu1 %vm4279_vm9, %v6401_v48 }
 0xab1   : > { %3738 = vst [vmem:[#allocation5 + $0x8] sm:$0xff] %v3187_v27  ;;  %3617 = vmatpush1.bf16.msra.mxu0 %v6077_v11  ;;  %4685 = vmatpush3.bf16.msra.mxu1 %v5068_v37  ;;  %v5071_v11 = vld [vmem:[#allocation13 + $0x50] ss:$12 sps:$4 sm:$0xff]  }
 0xab2   : > { %3618 = vmatprep.subr.bf16.mxu0 %v6079_v8  ;;  %4686 = vmatprep.subr.bf16.mxu1 %v6389_v42  ;;  %v6403_v8 = vld [vmem:[#allocation24_spill] sm:$0xff] }
 0xab3   : > { %3648 = vmatprep.mubr.bf16.mxu0 %v6402_v54  ;;  %4700 = vmatprep.mubr.msk.bf16.mxu1 %vm5339_vm0, %v6389_v42  ;;  %v5072_v54 = vld [vmem:[#allocation13 + $0x68] ss:$12 sps:$4 sm:$0xff]  }
 0xab5   : > { %3619 = vmatpush1.bf16.msra.mxu0 %v6088_v53  ;;  %4687 = vmatpush3.bf16.msra.mxu1 %v5069_v9  ;;  %v6406_v53 = vld [vmem:[#allocation27_spill] sm:$0xff] }
 0xab6   : > { %3620 = vmatprep.subr.bf16.mxu0 %v6092_v19  ;;  %4688 = vmatprep.subr.bf16.mxu1 %v6389_v42  ;;  %v5073_v19 = vld [vmem:[#allocation13 + $0x80] ss:$12 sps:$4 sm:$0xff]  }
 0xab9   : > { %3621 = vmatpush1.bf16.msra.mxu0 %v6098_v24  ;;  %4689 = vmatpush3.bf16.msra.mxu1 %v5070_v60  ;;  %v6408_v24 = vld [vmem:[#allocation29_spill] sm:$0xff] }
 0xaba   : > { %3622 = vmatprep.subr.bf16.mxu0 %v6403_v8  ;;  %4690 = vmatprep.subr.bf16.mxu1 %v6389_v42 }
 0xabd   : > { %3623 = vmatpush1.bf16.msra.mxu0 %v6404_v17  ;;  %4691 = vmatpush3.bf16.msra.mxu1 %v5071_v11 }
 0xabe   : > { %3624 = vmatprep.subr.bf16.mxu0 %v6405_v45  ;;  %4692 = vmatprep.subr.bf16.mxu1 %v6389_v42 }
 0xac1   : > { %3625 = vmatpush1.bf16.msra.mxu0 %v6406_v53  ;;  %4693 = vmatpush3.bf16.msra.mxu1 %v5072_v54 }
 0xac2   : > { %3626 = vmatprep.subr.bf16.mxu0 %v6407_v50  ;;  %4694 = vmatprep.subr.bf16.mxu1 %v6389_v42 }
 0xac5   : > { %3627 = vmatpush1.bf16.msra.mxu0 %v6408_v24  ;;  %4695 = vmatpush3.bf16.msra.mxu1 %v5073_v19 }
 0xac6   : > { %3628 = vmatprep.subr.bf16.mxu0 %v6409_v57  ;;  %4696 = vmatprep.subr.bf16.mxu1 %v6389_v42 }
 0xac9   : > { %3629 = vmatpush1.bf16.msra.mxu0 %v6410_v55  ;;  %4697 = vmatpush3.bf16.msra.mxu1 %v5074_v56 }
 0xaca   : > { %3630 = vmatprep.subr.bf16.mxu0 %v6411_v51  ;;  %4698 = vmatprep.subr.bf16.mxu1 %v6389_v42 }
 0xacd   : > { %3631 = vmatpush1.bf16.msra.mxu0 %v6412_v49  ;;  %4699 = vmatpush3.bf16.msra.mxu1 %v5075_v58 }
 0xb83   : > { %v3387_v5 = vpop.f32.mrb[28].mxu0  ;;  %v3430_v6 = vpop.f32.mrb[40].mxu1 }
 0xb84   : > { %3731 = vst [vmem:[#allocation3] sm:$0xff] %v3387_v5  ;;  %v3439_v34 = vadd.f32 %v3430_v6, %v6215_v13  ;;  %v3389_v22 = vpop.f32.mrb[29].mxu0  ;;  %v4682_v41 = vpop.f32.mrb[41].mxu1 }
 0xb85   : > { %3732 = vst [vmem:[#allocation3 + $0x8] sm:$0xff] %v3389_v22  ;;  %v3391_v26 = vpop.f32.mrb[30].mxu0  ;;  %v3433_v40 = vpop.f32.mrb[42].mxu1 }
 0xb86   : > { %v3443_v15 = vadd.f32 %v3441_v16, %v3439_v34  ;;  %3733 = vst [vmem:[#allocation3 + $0x10] sm:$0xff] %v3391_v26  ;;  %v3440_v25 = vadd.f32 %v3433_v40, %v6222_v43  ;;  %v3393_v62 = vpop.f32.mrb[31].mxu0  ;;  %v4683_v3 = vpop.f32.mrb[43].mxu1 }
 0xb87   : > { %3734 = vst [vmem:[#allocation3 + $0x18] sm:$0xff] %v3393_v62 }
 0xb88   : > { %v4283_v4 = vadd.f32 -1.0, %v3443_v15  ;;  %v3444_v18 = vadd.f32 %v3442_v46, %v3440_v25  ;;  %vm3445_vm0 = vcmp.gt.f32.partialorder %v3443_v15, 1.0 }
 0xb8a   : > { %v4284_v13 = vadd.f32 -1.0, %v3444_v18  ;;  %vm3446_vm10 = vcmp.gt.f32.partialorder %v3444_v18, 1.0  ;;  %v3449_v28 = vsel %vm3445_vm0, %v4283_v4, %v3443_v15 }
 0xb8b   : > { %vm4311_vm11 = vmpackc.low %vm3446_vm10, %vm3445_vm0  ;;  %3739 = vst [vmem:[#allocation6] sm:$0xff] %v3449_v28 }
 0xb8c   : > { %v3450_v21 = vsel %vm3446_vm10, %v4284_v13, %v3444_v18  ;;  %4312 = vmatmul.mubr.msk.bf16.vlgmr.msra.gmra.mrb[32].mxu0 %vm4311_vm11, %v6401_v48  ;;  %4701 = vmatmul.mubr.msk.bf16.vlgmr.msra.gmra.mrb[44].mxu1 %vm4311_vm11, %v6401_v48 }
 0xb8d   : > { %3740 = vst [vmem:[#allocation6 + $0x8] sm:$0xff] %v3450_v21 }
 0xc5f   : > { %v3650_v43 = vpop.f32.mrb[32].mxu0  ;;  %v3693_v12 = vpop.f32.mrb[44].mxu1 }
 0xc60   : > { %3727 = vst [vmem:[#allocation2] sm:$0xff] %v3650_v43  ;;  %v3700_v10 = vadd.f32 %v5090_v0, %v3693_v12  ;;  %v3652_v47 = vpop.f32.mrb[33].mxu0  ;;  %v4702_v14 = vpop.f32.mrb[45].mxu1 }
 0xc61   : > { %3728 = vst [vmem:[#allocation2 + $0x8] sm:$0xff] %v3652_v47  ;;  %v3654_v61 = vpop.f32.mrb[34].mxu0  ;;  %v3696_v1 = vpop.f32.mrb[46].mxu1 }
 0xc62   : > { %v3704_v7 = vadd.f32 %v3702_v32, %v3700_v10  ;;  %3729 = vst [vmem:[#allocation2 + $0x10] sm:$0xff] %v3654_v61  ;;  %v3701_v48 = vadd.f32 %v5090_v0, %v3696_v1  ;;  %v3656_v20 = vpop.f32.mrb[35].mxu0  ;;  %v4703_v29 = vpop.f32.mrb[47].mxu1 }
 0xc63   : > { %3730 = vst [vmem:[#allocation2 + $0x18] sm:$0xff] %v3656_v20 }
 0xc64   : > { %vm3706_vm12 = vcmp.gt.f32.partialorder %v3704_v7, 1.0  ;;  %v4315_v30 = vadd.f32 -1.0, %v3704_v7  ;;  %v3705_v52 = vadd.f32 %v3703_v23, %v3701_v48 }
 0xc65   : > { %v4317_v63 = vsel %vm3706_vm12, 1.0, %v6389_v42 }
 0xc66   : > { %v3710_v44 = vsel %vm3706_vm12, %v4315_v30, %v3704_v7  ;;  %vm3707_vm13 = vcmp.gt.f32.partialorder %v3705_v52, 1.0  ;;  %v4316_v31 = vadd.f32 -1.0, %v3705_v52 }
 0xc67   : > { %3741 = vst [vmem:[#allocation7] sm:$0xff] %v3710_v44  ;;  %v4318_v2 = vsel %vm3707_vm13, 1.0, %v6389_v42 }
 0xc68   : > { %v3711_v59 = vsel %vm3707_vm13, %v4316_v31, %v3705_v52  ;;  %v4351_v33 = vpack.c.bf16 %v4318_v2, %v4317_v63 }
 0xc69   : > { %3742 = vst [vmem:[#allocation7 + $0x8] sm:$0xff] %v3711_v59 }
 0xc6a   : > { %4355 = vst [vmem:[%s5618_s13 + $0x18] sm:$0xff] %v4351_v33  }
 0xc6b   : > { %5246 = shalt.err (!%p5243_p9)
}
 0xc6c   : > { %s5247_s13 = scalar_lea.hbm %s6285_s19, 512  ;;  %s5251_s22 = scalar_lea.hbm %s6413_s6, 1024 }
 0xc6d   : > { %p5248_p13 = scmp.ne.s32.totalorder %s6285_s19, %s5247_s13  ;;  %p5252_p7 = scmp.lt.u32.totalorder %s6285_s19, %s6413_s6 }
 0xc6e   : > { %p5253_p11 = scmp.lt.u32.totalorder %s5251_s22, %s5247_s13  ;;  %p5255_p4 = scmp.lt.u32.totalorder %s5247_s13, %s6285_s19 }
 0xc6f   : > { %p5249_p1 = pnand %p5248_p13, %p5542_p10 }
 0xc70   : > { %p5254_p2 = por %p5253_p11, %p5252_p7 }
 0xc71   : > { %p5250_p3 = pneg %p5249_p1 }
 0xc72   : > { %p5256_p6 = por %p5255_p4, %p5254_p2 }
 0xc74   : > { %p5257_p8 = pnand %p5256_p6, %p5250_p3 }
 0xc76   : > { %5260 = shalt.err (!%p5257_p8)
}
 0xc77   : > { %s5342_s15 = smov 64   ;;  %s5343_s5 = smov 4  }
 0xc78   : > { %4734 = dma.vmem_to_hbm [thread:$0]  (%p5542_p10), %s6287_s10, 512, %s6285_s19, %s3744_s27, %s5342_s15, %s5342_s15, %s5343_s5  }
 0xc79 PF: > { %s6414_s9 = sld [smem:[#allocation22_spill]]  ;;  %s6415_s11 = sld [smem:[#allocation23_spill]] }
 0xc7a   : > { %p6417_p0 = scmp.ge.s32.totalorder %s5323_s29, 2 }
 0xc7f   : > { %s3775_s30 = sand.u32 1, %s6414_s9   ;;  %p6416_p12 = scmp.ne.s32.totalorder %s6415_s11, 0 }
 0xc80   : > { %s3776_s23 = scalar_lea.sflag [#allocation10], %s3775_s30 }
 0xc81   : > { %p4754_p5 = pnand %p6417_p0, %p6416_p12 }
 0xc83   : > { %5298 = dma.done.wait (!%p4754_p5), %s3776_s23, 512  }
 0xc84   : > { %5300 = vsyncadd (!%p4754_p5), %s3776_s23, 4294966784  ;;  %s25_s29 = sadd.s32 1, %s5323_s29   ;;  %s6418_s24 = smov %s5307_s25 }
 0xc85   : > { %p22_p9 = scmp.ge.s32.totalorder %s25_s29, 4   ;;  %s6419_s25 = smov %s5311_s26 }
 0xc86   : > { %s6420_s26 = smov %s5551_s20  ;;  %s6421_s27 = smov %s5319_s28 }
 0xc87   : > { %s6422_s28 = smov %s6424_s18  ;;  %24 = sbr.rel (!%p22_p9) target bundleno = 12 (0xc), region = 119 }
 0xc8e   :  { %3781 = vsyncpa [#allocation9], 1 }
 0xc8f   :  { %3783 = vsyncpa [#allocation9 + $0x1], 1 }
 0xc90   :  { %3784 = vsyncpa [#allocation12], 1 }
 0xc91   :  { %3785 = vsyncpa [#allocation15], 1 }
 0xc92   :  { %3786 = vsyncpa [#allocation10], 1 }
 0xc93   :  { %3788 = vsyncpa [#allocation10 + $0x1], 1 }

</bundles_post_ra>
